<compile_context>
chip_gen: v5e
topology: v5e:2x2
jax: 0.10.0
libtpu: 0.0.40
codegen_flags: <defaults>
</compile_context>

<pallas_src>
import functools

import jax
import jax.numpy as jnp
from jax.experimental import pallas as pl
from jax.experimental.pallas import tpu as pltpu

_P0 = 128  # lane-aligned staging offset for the zero-padded sequence scratch


def _la_feature_kernel(x_ref, mask_ref, w_ref, bf_ref, feat_ref,
                       xp_ref, m_ref, l_ref, acc_ref, o2_ref, *, tl):
    """Fused conv(feature+attention) + masked online softmax + pooled features.

    Shapes (per grid step):
      x_ref    : (TB, E, L)          bf16   input tile (NCL layout)
      mask_ref : (TB, 1, Lm)         f32    1.0 = valid, 0.0 = padding (Lm = n_chunks*tl)
      w_ref    : (K, 2E, E)          bf16   per-tap [feature; attention] conv weights
      bf_ref   : (E, 1)              f32    feature-conv bias (added at finalize)
      feat_ref : (TB, 2E, 1)         f32    output: [o1 ; o2] per batch element
      xp_ref   : (E, 2*128 + Lm)     bf16   scratch: zero-padded staged sequence
      m/l/acc/o2_ref : (E, 1)        f32    online-softmax / max running stats
    """
    TB, E, L = x_ref.shape
    Lm = mask_ref.shape[2]
    K = w_ref.shape[0]
    pad = K // 2
    n_chunks = Lm // tl
    ncols = xp_ref.shape[1]

    # Zero only the halo / round-up-tail columns, once per grid step.  The
    # interior [_P0, _P0+L) is fully overwritten for every sample below.
    xp_ref[:, :_P0] = jnp.zeros((E, _P0), xp_ref.dtype)
    tail_w = ncols - (_P0 + L)
    xp_ref[:, pl.ds(_P0 + L, tail_w)] = jnp.zeros((E, tail_w), xp_ref.dtype)

    bf_col = bf_ref[...]                       # (E, 1)

    def per_sample(b, carry):
        # Stage sample b (already bf16) at a 128-lane-aligned offset, so the
        # store is a plain full-width vector store (no lane rotation).
        xp_ref[:, pl.ds(_P0, L)] = x_ref[b]
        mrow = mask_ref[b]                     # (1, Lm)

        # Running stats in VMEM scratch -> bounded register live ranges
        # across the statically-unrolled chunk loop.
        m_ref[...] = jnp.full((E, 1), -jnp.inf, jnp.float32)
        l_ref[...] = jnp.zeros((E, 1), jnp.float32)
        acc_ref[...] = jnp.zeros((E, 1), jnp.float32)
        o2_ref[...] = jnp.full((E, 1), -jnp.inf, jnp.float32)

        # Chunk starts must stay static (avoids dynamic minormost-dim slicing);
        # n_chunks is small (<= ceil(L/tl)) so this unroll stays bounded.
        for c in range(n_chunks):
            c0 = c * tl
            # K accumulating MXU matmuls; each conv tap reads an in-place slice
            # of the staged sequence (no (K*E, tl) im2col buffer).
            y = jnp.zeros((2 * E, tl), jnp.float32)
            for k in range(K):
                xs = xp_ref[:, pl.ds(_P0 - pad + c0 + k, tl)]      # (E, tl)
                y = y + jnp.dot(w_ref[k], xs,
                                preferred_element_type=jnp.float32)
            o_c = y[:E, :]    # feature conv chunk (bias added at finalize)
            a_c = y[E:, :]    # attention conv chunk (bias dropped: cancels in softmax)

            # masked_fill(mask == False, -1e9); round-up tail columns have mask 0.
            mk = mrow[:, c0:c0 + tl]                               # (1, tl)
            a_c = jnp.where(mk > 0.5, a_c, -1.0e9)

            # Online softmax update (per channel row, over the sequence axis).
            m_prev = m_ref[...]
            m_new = jnp.maximum(m_prev, jnp.max(a_c, axis=-1, keepdims=True))
            alpha = jnp.exp(m_prev - m_new)
            p = jnp.exp(a_c - m_new)
            l_ref[...] = alpha * l_ref[...] + jnp.sum(p, axis=-1, keepdims=True)
            acc_ref[...] = alpha * acc_ref[...] + jnp.sum(o_c * p, axis=-1,
                                                          keepdims=True)
            m_ref[...] = m_new

            # Running max over the REAL sequence positions (the user mask is
            # not applied, matching the reference); exclude only the round-up
            # tail positions >= L.
            if c0 + tl > L:
                pos = c0 + jax.lax.broadcasted_iota(jnp.int32, (1, tl), 1)
                o_m = jnp.where(pos < L, o_c, -jnp.inf)
            else:
                o_m = o_c
            o2_ref[...] = jnp.maximum(o2_ref[...],
                                      jnp.max(o_m, axis=-1, keepdims=True))

        # Softmax-weighted sum without materializing the softmax matrix; the
        # feature-conv bias is folded in once (exact division for parity).
        o1 = acc_ref[...] / l_ref[...] + bf_col
        o2 = o2_ref[...] + bf_col
        feat_ref[b] = jnp.concatenate([o1, o2], axis=0)            # (2E, 1)
        return carry

    jax.lax.fori_loop(0, TB, per_sample, 0)


def _la_mlp_kernel(feat_ref, w1_ref, b1_ref, s_ref, t_ref, w2_ref, b2_ref, out_ref):
    """Batched MLP head: Linear -> Dropout(id) -> ReLU -> BatchNorm(eval) -> Linear -> Sigmoid."""
    h = jnp.dot(feat_ref[...], w1_ref[...], preferred_element_type=jnp.float32) + b1_ref[...]
    h = jnp.maximum(h, 0.0)
    h = h * s_ref[...] + t_ref[...]
    z = jnp.dot(h, w2_ref[...], preferred_element_type=jnp.float32) + b2_ref[...]
    out_ref[...] = 1.0 / (1.0 + jnp.exp(-z))


def _padded_vmem_bytes(shape, itemsize):
    """Bytes of a VMEM array with the last two dims padded to (8, 128) tiles."""
    s = list(shape)
    s[-1] = -(-s[-1] // 128) * 128
    if len(s) >= 2:
        s[-2] = -(-s[-2] // 8) * 8
    n = 1
    for d in s:
        n *= d
    return n * itemsize


def light_attention_forward(x, mask, params, *, tb=None, tl=None):
    """x: [B, E, L] float, mask: [B, L] bool -> [B, out_dim] float32 (eval mode)."""
    B, E, L = x.shape
    wf = params["wf_oik"]                      # Conv1d weight (C_out, C_in, K)
    wa = params["wa_oik"]
    K = wf.shape[-1]
    pad = K // 2
    assert K % 2 == 1, "kernel_size must be odd (PyTorch uses padding=K//2)"
    assert pad <= _P0, "kernel_size too large for the 128-lane staging halo"
    H = params["w1"].shape[0]                  # MLP hidden width (32)
    OUT = params["w2"].shape[0]

    # Generation-aware VMEM capacity (v7x: 64 MiB/TC, v5e/v6e: 128 MiB).
    try:
        vmem_cap = int(getattr(pltpu.get_tpu_info(), "vmem_capacity_bytes",
                               64 << 20))
    except Exception:  # pragma: no cover - defensive fallback
        vmem_cap = 64 << 20

    # ---- sequence chunking / batch tiling ------------------------------------
    if tl is None:  # bigger chunks on 128 MiB parts (v5e/v6e), smaller on v7x
        cap_tl = 1024 if vmem_cap >= (96 << 20) else 512
        tl = L if L <= cap_tl else cap_tl
    n_chunks = -(-L // tl)
    Lm = n_chunks * tl

    if tb is None:  # keep the grid length >= 2 so both v7x TensorCores get work
        tb = 1
        for cand in (8, 4, 2):
            if B % cand == 0 and B // cand >= 2 and cand * E * L * 2 <= (4 << 20):
                tb = cand
                break
    assert B % tb == 0

    # ---- pack both convolutions as per-tap weight matrices ---------------------
    # wk[k] = [[Wf[:, :, k]], [Wa[:, :, k]]] of shape (2E, E); the kernel does
    # K accumulating matmuls so no im2col buffer is ever materialized.
    wk = jnp.transpose(jnp.concatenate([wf, wa], axis=0), (2, 0, 1))
    wk = wk.astype(jnp.bfloat16)                                  # (K, 2E, E)
    # Attention-conv bias dropped (per-row constant -> cancels in the softmax,
    # masked positions are forced to -1e9 either way); feature-conv bias is
    # added once at finalize (o1 += bf since softmax weights sum to 1; o2 likewise).
    bf_col = params["bf"].reshape(E, 1).astype(jnp.float32)

    # bf16 input: halves HBM->VMEM DMA bytes and the double-buffered x block.
    x_bf = x.astype(jnp.bfloat16)

    # mask: float, (B, 1, Lm); the round-up tail columns are marked invalid.
    maskf = mask.astype(jnp.float32).reshape(B, 1, L)
    if Lm > L:
        maskf = jnp.pad(maskf, ((0, 0), (0, 0), (0, Lm - L)))

    # ---- conv-weight buffering --------------------------------------------------
    # Single-buffer the packed weight when it is large (protTrans-sized E): its
    # index_map is constant, so default double-buffering only doubles VMEM
    # (~72 MiB at E=1024 -- exceeds v7x's entire 64 MiB VMEM).
    w_imap = lambda b: (0, 0, 0)
    w_bytes = _padded_vmem_bytes((K, 2 * E, E), 2)
    if w_bytes > (4 << 20):
        w_spec = pl.BlockSpec((K, 2 * E, E), w_imap, pipeline_mode=pl.Buffered(1))
        w_bufs = 1
    else:
        w_spec = pl.BlockSpec((K, 2 * E, E), w_imap)
        w_bufs = 2
    # TODO(synk): for embeddings_dim=1024 on v7x, additionally tile the conv
    #             output channels over a grid axis (per-channel softmax / max
    #             are independent) so the weight block shrinks below VMEM.

    # ---- explicit, generation-aware VMEM budget ---------------------------------
    budget = (2 * _padded_vmem_bytes((tb, E, L), 2)          # x blocks (2-deep)
              + 2 * _padded_vmem_bytes((tb, 1, Lm), 4)       # mask blocks
              + w_bufs * w_bytes                             # packed conv weights
              + 2 * _padded_vmem_bytes((E, 1), 4)            # feature bias
              + 2 * _padded_vmem_bytes((tb, 2 * E, 1), 4)    # pooled features
              + _padded_vmem_bytes((E, 2 * _P0 + Lm), 2)     # staging scratch
              + 4 * _padded_vmem_bytes((E, 1), 4)            # running stats
              + 8 * _padded_vmem_bytes((2 * E, tl), 4))      # per-chunk temporaries
    vmem_limit = int(max(16 << 20, min(int(0.8 * vmem_cap), budget)))

    feat = pl.pallas_call(
        functools.partial(_la_feature_kernel, tl=tl),
        out_shape=jax.ShapeDtypeStruct((B, 2 * E, 1), jnp.float32),
        grid=(B // tb,),
        in_specs=[
            pl.BlockSpec((tb, E, L), lambda b: (b, 0, 0)),        # x (bf16)
            pl.BlockSpec((tb, 1, Lm), lambda b: (b, 0, 0)),       # mask
            w_spec,                                               # conv weights
            pl.BlockSpec((E, 1), lambda b: (0, 0)),               # feature bias
        ],
        out_specs=pl.BlockSpec((tb, 2 * E, 1), lambda b: (b, 0, 0)),
        scratch_shapes=[
            pltpu.VMEM((E, 2 * _P0 + Lm), jnp.bfloat16),          # staged sequence
            pltpu.VMEM((E, 1), jnp.float32),                      # m (running max)
            pltpu.VMEM((E, 1), jnp.float32),                      # l (denominator)
            pltpu.VMEM((E, 1), jnp.float32),                      # acc (numerator)
            pltpu.VMEM((E, 1), jnp.float32),                      # o2 (feature max)
        ],
        compiler_params=pltpu.CompilerParams(
            dimension_semantics=("parallel",),
            vmem_limit_bytes=vmem_limit),
    )(x_bf, maskf, wk, bf_col)

    # Present a lane-dense [B, 2E] slab to the batched MLP GEMM (layout plumbing).
    feat2d = feat.reshape(B, 2 * E)

    # ---- batched MLP head: one GEMM pair over the whole batch (eval mode) ------
    eps = 1e-5
    w1t = params["w1"].T.astype(jnp.float32)                      # (2E, H)
    b1 = params["b1"].reshape(1, H).astype(jnp.float32)
    bn_s = (params["bn_gamma"] / jnp.sqrt(params["bn_rv"] + eps)).astype(jnp.float32)
    bn_t = (params["bn_beta"] - params["bn_rm"] * bn_s).astype(jnp.float32)
    bn_s = bn_s.reshape(1, H)
    bn_t = bn_t.reshape(1, H)
    w2t = params["w2"].T.astype(jnp.float32)                      # (H, OUT)
    b2 = params["b2"].reshape(1, OUT).astype(jnp.float32)

    out = pl.pallas_call(
        _la_mlp_kernel,
        out_shape=jax.ShapeDtypeStruct((B, OUT), jnp.float32),
        grid=(1,),
        in_specs=[
            pl.BlockSpec((B, 2 * E), lambda i: (0, 0)),
            pl.BlockSpec((2 * E, H), lambda i: (0, 0)),
            pl.BlockSpec((1, H), lambda i: (0, 0)),
            pl.BlockSpec((1, H), lambda i: (0, 0)),
            pl.BlockSpec((1, H), lambda i: (0, 0)),
            pl.BlockSpec((H, OUT), lambda i: (0, 0)),
            pl.BlockSpec((1, OUT), lambda i: (0, 0)),
        ],
        out_specs=pl.BlockSpec((B, OUT), lambda i: (0, 0)),
        compiler_params=pltpu.CompilerParams(dimension_semantics=("arbitrary",)),
    )(feat2d, w1t, b1, bn_s, bn_t, w2t, b2)
    return out


def reference_forward(x, mask, params):
    """Pure-JAX reference (eval-mode semantics), f32 / HIGHEST precision."""
    hi = jax.lax.Precision.HIGHEST
    K = params["wf_oik"].shape[-1]
    pad = K // 2

    def conv1d(w_oik, b):
        y = jax.lax.conv_general_dilated(
            x, w_oik, window_strides=(1,), padding=[(pad, pad)],
            dimension_numbers=("NCH", "OIH", "NCH"), precision=hi)
        return y + b[None, :, None]

    o = conv1d(params["wf_oik"], params["bf"])
    att = conv1d(params["wa_oik"], params["ba"])
    att = jnp.where(mask[:, None, :], att, -1.0e9)
    sm = jax.nn.softmax(att, axis=-1)
    o1 = jnp.sum(o * sm, axis=-1)
    o2 = jnp.max(o, axis=-1)
    feat = jnp.concatenate([o1, o2], axis=-1)
    h = jnp.dot(feat, params["w1"].T, precision=hi) + params["b1"]
    h = jnp.maximum(h, 0.0)
    eps = 1e-5
    scale = params["bn_gamma"] / jnp.sqrt(params["bn_rv"] + eps)
    shift = params["bn_beta"] - params["bn_rm"] * scale
    h = h * scale + shift
    logits = jnp.dot(h, params["w2"].T, precision=hi) + params["b2"]
    return jax.nn.sigmoid(logits)


if __name__ == "__main__":
    def run_case(B, E, L, K, OUT, lengths, seed, tb=None, tl=None):
        key = jax.random.PRNGKey(seed)
        ks = jax.random.split(key, 13)
        f32 = jnp.float32
        # Pre-round conv operands to bf16-representable values so the f32/HIGHEST
        # reference and the bf16-MXU kernel see identical conv inputs.
        r16 = lambda a: a.astype(jnp.bfloat16).astype(f32)

        params = dict(
            wf_oik=r16(jax.random.normal(ks[0], (E, E, K), f32) * 0.1),
            bf=jax.random.normal(ks[1], (E,), f32) * 0.1,
            wa_oik=r16(jax.random.normal(ks[2], (E, E, K), f32) * 0.1),
            ba=jax.random.normal(ks[3], (E,), f32) * 0.1,
            w1=jax.random.normal(ks[4], (32, 2 * E), f32) * 0.1,
            b1=jax.random.normal(ks[5], (32,), f32) * 0.1,
            w2=jax.random.normal(ks[6], (OUT, 32), f32) * 0.1,
            b2=jax.random.normal(ks[7], (OUT,), f32) * 0.1,
            bn_gamma=1.0 + 0.1 * jax.random.normal(ks[8], (32,), f32),
            bn_beta=0.1 * jax.random.normal(ks[9], (32,), f32),
            bn_rm=0.1 * jax.random.normal(ks[10], (32,), f32),
            bn_rv=1.0 + 0.5 * jax.random.uniform(ks[11], (32,), f32),
        )
        x = r16(jax.random.normal(ks[12], (B, E, L), f32))
        mask = jnp.arange(L)[None, :] < jnp.asarray(lengths, jnp.int32)[:, None]

        y = light_attention_forward(x, mask, params, tb=tb, tl=tl)
        y = jax.block_until_ready(y)
        y_ref = reference_forward(x, mask, params)
        assert y.shape == (B, OUT), (y.shape, (B, OUT))
        assert jnp.allclose(y, y_ref, rtol=2e-2, atol=1e-2), (y, y_ref)

    # Toy config consistent with the module (odd kernel_size, small dims);
    # one full-length and one partially masked sequence; single chunk; grid of 2.
    run_case(B=2, E=32, L=16, K=9, OUT=1, lengths=[16, 11], seed=0)
    # Exercises a multi-step "parallel" batch grid (tb=2 of B=4), the in-kernel
    # batch fori_loop, multiple sequence chunks incl. a partial tail chunk,
    # output_dim > 1 and non-trivial BatchNorm running stats.
    run_case(B=4, E=128, L=160, K=9, OUT=3, lengths=[160, 130, 97, 1],
             seed=1, tb=2, tl=64)

    print("KERNEL_OK")
</pallas_src>

<mosaic_0001>
module attributes {stable_mosaic.version = 11 : i64} {
  func.func @_la_feature_kernel(%arg0: i32, %arg1: memref<1x32x16xbf16, #tpu.memory_space<vmem>>, %arg2: memref<1x1x16xf32, #tpu.memory_space<vmem>>, %arg3: memref<9x64x32xbf16, #tpu.memory_space<vmem>>, %arg4: memref<32x1xf32, #tpu.memory_space<vmem>>, %arg5: memref<1x64x1xf32, #tpu.memory_space<vmem>>, %arg6: memref<32x272xbf16, #tpu.memory_space<vmem>>, %arg7: memref<32x1xf32, #tpu.memory_space<vmem>>, %arg8: memref<32x1xf32, #tpu.memory_space<vmem>>, %arg9: memref<32x1xf32, #tpu.memory_space<vmem>>, %arg10: memref<32x1xf32, #tpu.memory_space<vmem>>) attributes {dimension_semantics = [#tpu.dimension_semantics<parallel>], iteration_bounds = array<i64: 2>, scalar_prefetch = 0 : i64, scratch_operands = 5 : i64, tpu.core_type = #tpu.core_type<tc>, window_params = [{transform_indices = @transform_0, window_bounds = array<i64: 1, 32, 16>}, {transform_indices = @transform_1, window_bounds = array<i64: 1, 1, 16>}, {pipeline_mode = #tpu.pipeline_mode<synchronous>, transform_indices = @transform_2, window_bounds = array<i64: 9, 64, 32>}, {pipeline_mode = #tpu.pipeline_mode<synchronous>, transform_indices = @transform_3, window_bounds = array<i64: 32, 1>}, {transform_indices = @transform_4, window_bounds = array<i64: 1, 64, 1>}]} {
    %cst = arith.constant 0.000000e+00 : bf16
    %0 = vector.broadcast %cst : bf16 to vector<32x128xbf16>
    %c0 = arith.constant 0 : index
    %c0_0 = arith.constant 0 : index
    %1 = vector.load %arg6[%c0, %c0_0] : memref<32x272xbf16, #tpu.memory_space<vmem>>, vector<32x128xbf16>
    tpu.vector_store %arg6[%c0, %c0_0], %0 {strides = array<i32>} : memref<32x272xbf16, #tpu.memory_space<vmem>>, vector<32x128xbf16>,
    %cst_1 = arith.constant 0.000000e+00 : bf16
    %2 = vector.broadcast %cst_1 : bf16 to vector<32x128xbf16>
    %c0_2 = arith.constant 0 : index
    %c144 = arith.constant 144 : index
    %3 = vector.load %arg6[%c0_2, %c144] : memref<32x272xbf16, #tpu.memory_space<vmem>>, vector<32x128xbf16>
    tpu.vector_store %arg6[%c0_2, %c144], %2 {strides = array<i32>} : memref<32x272xbf16, #tpu.memory_space<vmem>>, vector<32x128xbf16>,
    %c0_3 = arith.constant 0 : index
    %c0_4 = arith.constant 0 : index
    %4 = vector.load %arg4[%c0_3, %c0_4] : memref<32x1xf32, #tpu.memory_space<vmem>>, vector<32x1xf32>
    %c0_i32 = arith.constant 0 : i32
    %5 = arith.index_cast %c0_i32 : i32 to index
    %c0_5 = arith.constant 0 : index
    %c0_6 = arith.constant 0 : index
    %6 = vector.load %arg1[%5, %c0_5, %c0_6] : memref<1x32x16xbf16, #tpu.memory_space<vmem>>, vector<1x32x16xbf16>
    %7 = vector.shape_cast %6 : vector<1x32x16xbf16> to vector<32x16xbf16>
    %c0_7 = arith.constant 0 : index
    %c128 = arith.constant 128 : index
    %8 = vector.load %arg6[%c0_7, %c128] : memref<32x272xbf16, #tpu.memory_space<vmem>>, vector<32x16xbf16>
    tpu.vector_store %arg6[%c0_7, %c128], %7 {strides = array<i32>} : memref<32x272xbf16, #tpu.memory_space<vmem>>, vector<32x16xbf16>,
    %9 = arith.index_cast %c0_i32 : i32 to index
    %c0_8 = arith.constant 0 : index
    %c0_9 = arith.constant 0 : index
    %10 = vector.load %arg2[%9, %c0_8, %c0_9] : memref<1x1x16xf32, #tpu.memory_space<vmem>>, vector<1x1x16xf32>
    %11 = vector.shape_cast %10 : vector<1x1x16xf32> to vector<1x16xf32>
    %cst_10 = arith.constant 0xFF800000 : f32
    %12 = vector.broadcast %cst_10 : f32 to vector<32x1xf32>
    %c0_11 = arith.constant 0 : index
    %c0_12 = arith.constant 0 : index
    %13 = vector.load %arg7[%c0_11, %c0_12] : memref<32x1xf32, #tpu.memory_space<vmem>>, vector<32x1xf32>
    tpu.vector_store %arg7[%c0_11, %c0_12], %12 {strides = array<i32>} : memref<32x1xf32, #tpu.memory_space<vmem>>, vector<32x1xf32>,
    %cst_13 = arith.constant 0.000000e+00 : f32
    %14 = vector.broadcast %cst_13 : f32 to vector<32x1xf32>
    %c0_14 = arith.constant 0 : index
    %c0_15 = arith.constant 0 : index
    %15 = vector.load %arg8[%c0_14, %c0_15] : memref<32x1xf32, #tpu.memory_space<vmem>>, vector<32x1xf32>
    tpu.vector_store %arg8[%c0_14, %c0_15], %14 {strides = array<i32>} : memref<32x1xf32, #tpu.memory_space<vmem>>, vector<32x1xf32>,
    %cst_16 = arith.constant 0.000000e+00 : f32
    %16 = vector.broadcast %cst_16 : f32 to vector<32x1xf32>
    %c0_17 = arith.constant 0 : index
    %c0_18 = arith.constant 0 : index
    %17 = vector.load %arg9[%c0_17, %c0_18] : memref<32x1xf32, #tpu.memory_space<vmem>>, vector<32x1xf32>
    tpu.vector_store %arg9[%c0_17, %c0_18], %16 {strides = array<i32>} : memref<32x1xf32, #tpu.memory_space<vmem>>, vector<32x1xf32>,
    %cst_19 = arith.constant 0xFF800000 : f32
    %18 = vector.broadcast %cst_19 : f32 to vector<32x1xf32>
    %c0_20 = arith.constant 0 : index
    %c0_21 = arith.constant 0 : index
    %19 = vector.load %arg10[%c0_20, %c0_21] : memref<32x1xf32, #tpu.memory_space<vmem>>, vector<32x1xf32>
    tpu.vector_store %arg10[%c0_20, %c0_21], %18 {strides = array<i32>} : memref<32x1xf32, #tpu.memory_space<vmem>>, vector<32x1xf32>,
    %cst_22 = arith.constant 0.000000e+00 : f32
    %20 = vector.broadcast %cst_22 : f32 to vector<64x16xf32>
    %c0_23 = arith.constant 0 : index
    %c124 = arith.constant 124 : index
    %21 = vector.load %arg6[%c0_23, %c124] : memref<32x272xbf16, #tpu.memory_space<vmem>>, vector<32x16xbf16>
    %c0_24 = arith.constant 0 : index
    %c0_25 = arith.constant 0 : index
    %c0_26 = arith.constant 0 : index
    %22 = vector.load %arg3[%c0_24, %c0_25, %c0_26] : memref<9x64x32xbf16, #tpu.memory_space<vmem>>, vector<1x64x32xbf16>
    %23 = vector.shape_cast %22 : vector<1x64x32xbf16> to vector<64x32xbf16>
    %cst_27 = arith.constant dense<0.000000e+00> : vector<64x16xf32>
    %24 = tpu.matmul %23, %21, %cst_27 {dimension_numbers = #tpu.dot_dimension_numbers<[1], [0], [0], [1], [0, 0, 1, 1], [], []>} : vector<64x32xbf16>, vector<32x16xbf16>, vector<64x16xf32> -> vector<64x16xf32>
    %25 = arith.addf %20, %24 : vector<64x16xf32>
    %c0_28 = arith.constant 0 : index
    %c125 = arith.constant 125 : index
    %26 = vector.load %arg6[%c0_28, %c125] : memref<32x272xbf16, #tpu.memory_space<vmem>>, vector<32x16xbf16>
    %c1 = arith.constant 1 : index
    %c0_29 = arith.constant 0 : index
    %c0_30 = arith.constant 0 : index
    %27 = vector.load %arg3[%c1, %c0_29, %c0_30] : memref<9x64x32xbf16, #tpu.memory_space<vmem>>, vector<1x64x32xbf16>
    %28 = vector.shape_cast %27 : vector<1x64x32xbf16> to vector<64x32xbf16>
    %cst_31 = arith.constant dense<0.000000e+00> : vector<64x16xf32>
    %29 = tpu.matmul %28, %26, %cst_31 {dimension_numbers = #tpu.dot_dimension_numbers<[1], [0], [0], [1], [0, 0, 1, 1], [], []>} : vector<64x32xbf16>, vector<32x16xbf16>, vector<64x16xf32> -> vector<64x16xf32>
    %30 = arith.addf %25, %29 : vector<64x16xf32>
    %c0_32 = arith.constant 0 : index
    %c126 = arith.constant 126 : index
    %31 = vector.load %arg6[%c0_32, %c126] : memref<32x272xbf16, #tpu.memory_space<vmem>>, vector<32x16xbf16>
    %c2 = arith.constant 2 : index
    %c0_33 = arith.constant 0 : index
    %c0_34 = arith.constant 0 : index
    %32 = vector.load %arg3[%c2, %c0_33, %c0_34] : memref<9x64x32xbf16, #tpu.memory_space<vmem>>, vector<1x64x32xbf16>
    %33 = vector.shape_cast %32 : vector<1x64x32xbf16> to vector<64x32xbf16>
    %cst_35 = arith.constant dense<0.000000e+00> : vector<64x16xf32>
    %34 = tpu.matmul %33, %31, %cst_35 {dimension_numbers = #tpu.dot_dimension_numbers<[1], [0], [0], [1], [0, 0, 1, 1], [], []>} : vector<64x32xbf16>, vector<32x16xbf16>, vector<64x16xf32> -> vector<64x16xf32>
    %35 = arith.addf %30, %34 : vector<64x16xf32>
    %c0_36 = arith.constant 0 : index
    %c127 = arith.constant 127 : index
    %36 = vector.load %arg6[%c0_36, %c127] : memref<32x272xbf16, #tpu.memory_space<vmem>>, vector<32x16xbf16>
    %c3 = arith.constant 3 : index
    %c0_37 = arith.constant 0 : index
    %c0_38 = arith.constant 0 : index
    %37 = vector.load %arg3[%c3, %c0_37, %c0_38] : memref<9x64x32xbf16, #tpu.memory_space<vmem>>, vector<1x64x32xbf16>
    %38 = vector.shape_cast %37 : vector<1x64x32xbf16> to vector<64x32xbf16>
    %cst_39 = arith.constant dense<0.000000e+00> : vector<64x16xf32>
    %39 = tpu.matmul %38, %36, %cst_39 {dimension_numbers = #tpu.dot_dimension_numbers<[1], [0], [0], [1], [0, 0, 1, 1], [], []>} : vector<64x32xbf16>, vector<32x16xbf16>, vector<64x16xf32> -> vector<64x16xf32>
    %40 = arith.addf %35, %39 : vector<64x16xf32>
    %c0_40 = arith.constant 0 : index
    %c128_41 = arith.constant 128 : index
    %41 = vector.load %arg6[%c0_40, %c128_41] : memref<32x272xbf16, #tpu.memory_space<vmem>>, vector<32x16xbf16>
    %c4 = arith.constant 4 : index
    %c0_42 = arith.constant 0 : index
    %c0_43 = arith.constant 0 : index
    %42 = vector.load %arg3[%c4, %c0_42, %c0_43] : memref<9x64x32xbf16, #tpu.memory_space<vmem>>, vector<1x64x32xbf16>
    %43 = vector.shape_cast %42 : vector<1x64x32xbf16> to vector<64x32xbf16>
    %cst_44 = arith.constant dense<0.000000e+00> : vector<64x16xf32>
    %44 = tpu.matmul %43, %41, %cst_44 {dimension_numbers = #tpu.dot_dimension_numbers<[1], [0], [0], [1], [0, 0, 1, 1], [], []>} : vector<64x32xbf16>, vector<32x16xbf16>, vector<64x16xf32> -> vector<64x16xf32>
    %45 = arith.addf %40, %44 : vector<64x16xf32>
    %c0_45 = arith.constant 0 : index
    %c129 = arith.constant 129 : index
    %46 = vector.load %arg6[%c0_45, %c129] : memref<32x272xbf16, #tpu.memory_space<vmem>>, vector<32x16xbf16>
    %c5 = arith.constant 5 : index
    %c0_46 = arith.constant 0 : index
    %c0_47 = arith.constant 0 : index
    %47 = vector.load %arg3[%c5, %c0_46, %c0_47] : memref<9x64x32xbf16, #tpu.memory_space<vmem>>, vector<1x64x32xbf16>
    %48 = vector.shape_cast %47 : vector<1x64x32xbf16> to vector<64x32xbf16>
    %cst_48 = arith.constant dense<0.000000e+00> : vector<64x16xf32>
    %49 = tpu.matmul %48, %46, %cst_48 {dimension_numbers = #tpu.dot_dimension_numbers<[1], [0], [0], [1], [0, 0, 1, 1], [], []>} : vector<64x32xbf16>, vector<32x16xbf16>, vector<64x16xf32> -> vector<64x16xf32>
    %50 = arith.addf %45, %49 : vector<64x16xf32>
    %c0_49 = arith.constant 0 : index
    %c130 = arith.constant 130 : index
    %51 = vector.load %arg6[%c0_49, %c130] : memref<32x272xbf16, #tpu.memory_space<vmem>>, vector<32x16xbf16>
    %c6 = arith.constant 6 : index
    %c0_50 = arith.constant 0 : index
    %c0_51 = arith.constant 0 : index
    %52 = vector.load %arg3[%c6, %c0_50, %c0_51] : memref<9x64x32xbf16, #tpu.memory_space<vmem>>, vector<1x64x32xbf16>
    %53 = vector.shape_cast %52 : vector<1x64x32xbf16> to vector<64x32xbf16>
    %cst_52 = arith.constant dense<0.000000e+00> : vector<64x16xf32>
    %54 = tpu.matmul %53, %51, %cst_52 {dimension_numbers = #tpu.dot_dimension_numbers<[1], [0], [0], [1], [0, 0, 1, 1], [], []>} : vector<64x32xbf16>, vector<32x16xbf16>, vector<64x16xf32> -> vector<64x16xf32>
    %55 = arith.addf %50, %54 : vector<64x16xf32>
    %c0_53 = arith.constant 0 : index
    %c131 = arith.constant 131 : index
    %56 = vector.load %arg6[%c0_53, %c131] : memref<32x272xbf16, #tpu.memory_space<vmem>>, vector<32x16xbf16>
    %c7 = arith.constant 7 : index
    %c0_54 = arith.constant 0 : index
    %c0_55 = arith.constant 0 : index
    %57 = vector.load %arg3[%c7, %c0_54, %c0_55] : memref<9x64x32xbf16, #tpu.memory_space<vmem>>, vector<1x64x32xbf16>
    %58 = vector.shape_cast %57 : vector<1x64x32xbf16> to vector<64x32xbf16>
    %cst_56 = arith.constant dense<0.000000e+00> : vector<64x16xf32>
    %59 = tpu.matmul %58, %56, %cst_56 {dimension_numbers = #tpu.dot_dimension_numbers<[1], [0], [0], [1], [0, 0, 1, 1], [], []>} : vector<64x32xbf16>, vector<32x16xbf16>, vector<64x16xf32> -> vector<64x16xf32>
    %60 = arith.addf %55, %59 : vector<64x16xf32>
    %c0_57 = arith.constant 0 : index
    %c132 = arith.constant 132 : index
    %61 = vector.load %arg6[%c0_57, %c132] : memref<32x272xbf16, #tpu.memory_space<vmem>>, vector<32x16xbf16>
    %c8 = arith.constant 8 : index
    %c0_58 = arith.constant 0 : index
    %c0_59 = arith.constant 0 : index
    %62 = vector.load %arg3[%c8, %c0_58, %c0_59] : memref<9x64x32xbf16, #tpu.memory_space<vmem>>, vector<1x64x32xbf16>
    %63 = vector.shape_cast %62 : vector<1x64x32xbf16> to vector<64x32xbf16>
    %cst_60 = arith.constant dense<0.000000e+00> : vector<64x16xf32>
    %64 = tpu.matmul %63, %61, %cst_60 {dimension_numbers = #tpu.dot_dimension_numbers<[1], [0], [0], [1], [0, 0, 1, 1], [], []>} : vector<64x32xbf16>, vector<32x16xbf16>, vector<64x16xf32> -> vector<64x16xf32>
    %65 = arith.addf %60, %64 : vector<64x16xf32>
    %66 = vector.extract_strided_slice %65 {offsets = [0, 0], sizes = [32, 16], strides = [1, 1]} : vector<64x16xf32> to vector<32x16xf32>
    %67 = vector.extract_strided_slice %65 {offsets = [32, 0], sizes = [32, 16], strides = [1, 1]} : vector<64x16xf32> to vector<32x16xf32>
    %cst_61 = arith.constant 5.000000e-01 : f32
    %68 = vector.broadcast %cst_61 : f32 to vector<1x16xf32>
    %69 = arith.cmpf ogt, %11, %68 : vector<1x16xf32>
    %cst_62 = arith.constant -1.000000e+09 : f32
    %70 = vector.shape_cast %69 : vector<1x16xi1> to vector<1x16xi1>
    %71 = vector.broadcast %70 : vector<1x16xi1> to vector<32x16xi1>
    %72 = vector.broadcast %cst_62 : f32 to vector<32x16xf32>
    %73 = arith.select %71, %67, %72 : vector<32x16xi1>, vector<32x16xf32>
    %c0_63 = arith.constant 0 : index
    %c0_64 = arith.constant 0 : index
    %74 = vector.load %arg7[%c0_63, %c0_64] : memref<32x1xf32, #tpu.memory_space<vmem>>, vector<32x1xf32>
    %cst_65 = arith.constant dense<0xFF800000> : vector<32xf32>
    %75 = vector.multi_reduction <maximumf>, %73, %cst_65 [1] : vector<32x16xf32> to vector<32xf32>
    %76 = vector.shape_cast %75 : vector<32xf32> to vector<32x1xf32>
    %77 = arith.maximumf %74, %76 : vector<32x1xf32>
    %78 = arith.subf %74, %77 : vector<32x1xf32>
    %79 = math.exp %78 : vector<32x1xf32>
    %80 = vector.broadcast %77 : vector<32x1xf32> to vector<32x16xf32>
    %81 = arith.subf %73, %80 : vector<32x16xf32>
    %82 = math.exp %81 : vector<32x16xf32>
    %c0_66 = arith.constant 0 : index
    %c0_67 = arith.constant 0 : index
    %83 = vector.load %arg8[%c0_66, %c0_67] : memref<32x1xf32, #tpu.memory_space<vmem>>, vector<32x1xf32>
    %84 = arith.mulf %79, %83 : vector<32x1xf32>
    %cst_68 = arith.constant dense<0.000000e+00> : vector<32xf32>
    %85 = vector.multi_reduction <add>, %82, %cst_68 [1] : vector<32x16xf32> to vector<32xf32>
    %86 = vector.shape_cast %85 : vector<32xf32> to vector<32x1xf32>
    %87 = arith.addf %84, %86 : vector<32x1xf32>
    %c0_69 = arith.constant 0 : index
    %c0_70 = arith.constant 0 : index
    %88 = vector.load %arg8[%c0_69, %c0_70] : memref<32x1xf32, #tpu.memory_space<vmem>>, vector<32x1xf32>
    tpu.vector_store %arg8[%c0_69, %c0_70], %87 {strides = array<i32>} : memref<32x1xf32, #tpu.memory_space<vmem>>, vector<32x1xf32>,
    %c0_71 = arith.constant 0 : index
    %c0_72 = arith.constant 0 : index
    %89 = vector.load %arg9[%c0_71, %c0_72] : memref<32x1xf32, #tpu.memory_space<vmem>>, vector<32x1xf32>
    %90 = arith.mulf %79, %89 : vector<32x1xf32>
    %91 = arith.mulf %66, %82 : vector<32x16xf32>
    %cst_73 = arith.constant dense<0.000000e+00> : vector<32xf32>
    %92 = vector.multi_reduction <add>, %91, %cst_73 [1] : vector<32x16xf32> to vector<32xf32>
    %93 = vector.shape_cast %92 : vector<32xf32> to vector<32x1xf32>
    %94 = arith.addf %90, %93 : vector<32x1xf32>
    %c0_74 = arith.constant 0 : index
    %c0_75 = arith.constant 0 : index
    %95 = vector.load %arg9[%c0_74, %c0_75] : memref<32x1xf32, #tpu.memory_space<vmem>>, vector<32x1xf32>
    tpu.vector_store %arg9[%c0_74, %c0_75], %94 {strides = array<i32>} : memref<32x1xf32, #tpu.memory_space<vmem>>, vector<32x1xf32>,
    %c0_76 = arith.constant 0 : index
    %c0_77 = arith.constant 0 : index
    %96 = vector.load %arg7[%c0_76, %c0_77] : memref<32x1xf32, #tpu.memory_space<vmem>>, vector<32x1xf32>
    tpu.vector_store %arg7[%c0_76, %c0_77], %77 {strides = array<i32>} : memref<32x1xf32, #tpu.memory_space<vmem>>, vector<32x1xf32>,
    %c0_78 = arith.constant 0 : index
    %c0_79 = arith.constant 0 : index
    %97 = vector.load %arg10[%c0_78, %c0_79] : memref<32x1xf32, #tpu.memory_space<vmem>>, vector<32x1xf32>
    %cst_80 = arith.constant dense<0xFF800000> : vector<32xf32>
    %98 = vector.multi_reduction <maximumf>, %66, %cst_80 [1] : vector<32x16xf32> to vector<32xf32>
    %99 = vector.shape_cast %98 : vector<32xf32> to vector<32x1xf32>
    %100 = arith.maximumf %97, %99 : vector<32x1xf32>
    %c0_81 = arith.constant 0 : index
    %c0_82 = arith.constant 0 : index
    %101 = vector.load %arg10[%c0_81, %c0_82] : memref<32x1xf32, #tpu.memory_space<vmem>>, vector<32x1xf32>
    tpu.vector_store %arg10[%c0_81, %c0_82], %100 {strides = array<i32>} : memref<32x1xf32, #tpu.memory_space<vmem>>, vector<32x1xf32>,
    %c0_83 = arith.constant 0 : index
    %c0_84 = arith.constant 0 : index
    %102 = vector.load %arg9[%c0_83, %c0_84] : memref<32x1xf32, #tpu.memory_space<vmem>>, vector<32x1xf32>
    %c0_85 = arith.constant 0 : index
    %c0_86 = arith.constant 0 : index
    %103 = vector.load %arg8[%c0_85, %c0_86] : memref<32x1xf32, #tpu.memory_space<vmem>>, vector<32x1xf32>
    %104 = arith.divf %102, %103 : vector<32x1xf32>
    %105 = arith.addf %104, %4 : vector<32x1xf32>
    %c0_87 = arith.constant 0 : index
    %c0_88 = arith.constant 0 : index
    %106 = vector.load %arg10[%c0_87, %c0_88] : memref<32x1xf32, #tpu.memory_space<vmem>>, vector<32x1xf32>
    %107 = arith.addf %106, %4 : vector<32x1xf32>
    %108 = tpu.concatenate %105, %107 in 0 : vector<32x1xf32>, vector<32x1xf32> -> vector<64x1xf32>
    %109 = arith.index_cast %c0_i32 : i32 to index
    %c0_89 = arith.constant 0 : index
    %c0_90 = arith.constant 0 : index
    %110 = vector.load %arg5[%109, %c0_89, %c0_90] : memref<1x64x1xf32, #tpu.memory_space<vmem>>, vector<1x64x1xf32>
    %111 = vector.shape_cast %110 : vector<1x64x1xf32> to vector<64x1xf32>
    %112 = vector.shape_cast %108 : vector<64x1xf32> to vector<1x64x1xf32>
    tpu.vector_store %arg5[%109, %c0_89, %c0_90], %112 {strides = array<i32>} : memref<1x64x1xf32, #tpu.memory_space<vmem>>, vector<1x64x1xf32>,
    %c1_i32 = arith.constant 1 : i32
    return
  }
  func.func @transform_0(%arg0: i32) -> (i32, i32, i32) {
    %c0_i32 = arith.constant 0 : i32
    %c0_i32_0 = arith.constant 0 : i32
    %c0_i32_1 = arith.constant 0 : i32
    return %arg0, %c0_i32, %c0_i32_0 : i32, i32, i32
  }
  func.func @transform_1(%arg0: i32) -> (i32, i32, i32) {
    %c0_i32 = arith.constant 0 : i32
    %c0_i32_0 = arith.constant 0 : i32
    %c0_i32_1 = arith.constant 0 : i32
    return %arg0, %c0_i32, %c0_i32_0 : i32, i32, i32
  }
  func.func @transform_2(%arg0: i32) -> (i32, i32, i32) {
    %c0_i32 = arith.constant 0 : i32
    %c0_i32_0 = arith.constant 0 : i32
    %c0_i32_1 = arith.constant 0 : i32
    %c0_i32_2 = arith.constant 0 : i32
    return %c0_i32, %c0_i32_0, %c0_i32_1 : i32, i32, i32
  }
  func.func @transform_3(%arg0: i32) -> (i32, i32) {
    %c0_i32 = arith.constant 0 : i32
    %c0_i32_0 = arith.constant 0 : i32
    %c0_i32_1 = arith.constant 0 : i32
    return %c0_i32, %c0_i32_0 : i32, i32
  }
  func.func @transform_4(%arg0: i32) -> (i32, i32, i32) {
    %c0_i32 = arith.constant 0 : i32
    %c0_i32_0 = arith.constant 0 : i32
    %c0_i32_1 = arith.constant 0 : i32
    return %arg0, %c0_i32, %c0_i32_0 : i32, i32, i32
  }
}

</mosaic_0001>

<bundles_post_ra>
// kernel: tpu_custom_call.1
= control target key start
LH: loop header
LB: loop body
LE: loop exit
PB: predicated region body
PF: predicated region fallthrough
CT: control target
= control target key end

     0   :  { %s1785_s15 = smov 0   ;;  %s2197_s0 = inlined_call_operand.vmem [shape: bf16[2,32,16], index: 0, kind: input, shape index: {}]   ;;  %s2198_s1 = inlined_call_operand.vmem [shape: f32[2,1,16], index: 1, kind: input, shape index: {}]   ;;  %s2199_s2 = inlined_call_operand.vmem [shape: bf16[9,64,32], index: 2, kind: input, shape index: {}]   ;;  %s2200_s3 = inlined_call_operand.vmem [shape: f32[32,1], index: 3, kind: input, shape index: {}]   ;;  %s2201_s4 = inlined_call_operand.vmem [shape: f32[2,64,1], index: 4, kind: output, shape index: {}]  }
   0x1 LB: > { %s1366_s16 = sadd.s32 4294967295, %s1747_s15   ;;  %p1370_p0 = scmp.ge.s32.totalorder %s1747_s15, 1  ;;  %s1747_s15 = sphi %s1785_s15, %s14_s15  }
   0x2   : > { %p170_p1 = scmp.lt.s32.totalorder %s1747_s15, 3 }
   0x4   : > { %p171_p2 = pnand %p1370_p0, %p170_p1 }
   0x5   : > { %p199_p3 = scmp.lt.s32.totalorder (!%p171_p2), %s1366_s16, 1  ;;  %s1750_s21 = smov (!%p171_p2), 3  }
   0x6   : > { %174 = sbr.rel (%p171_p2) target bundleno = 837 (0x345), region = 36  ;;  %s1751_s22 = smov (!%p171_p2), 2  }
   0x7   : > { %s1752_s23 = smov (!%p171_p2), 1   ;;  %s1753_s24 = smov (!%p171_p2), 4  }
   0x8   : > { %s1754_s25 = smov (!%p171_p2), 125   ;;  %s1755_s26 = smov (!%p171_p2), 126  }
   0x9   : > { %s1756_s27 = smov (!%p171_p2), 127   ;;  %s1757_s28 = smov (!%p171_p2), 124  }
   0xb   : > { %vm217_vm0 = vcmask 1043584   ;;  %vm218_vm1 = vcmask 130052   ;;  %v1749_v0 = vmov 0   ;;  %s2207_s16 = smov (!%p199_p3, %s1366_s16), 1  ;;  %vm232_vm3 = vcmask 125952   ;;  %v1656_v36 = vld [vmem:[%s2199_s2 + $0x28] sm:$0xff] }
   0xc   : > { %215 = vst [vmem:[#allocation2 + $0x18] sm:$0xf] %v1749_v0  ;;  %1714 = vset.pattern.permute.xlu0 %v1749_v0  ;;  %1715 = vset.pattern.permute.xlu1 %v1749_v0  ;;  %vm1797_vm2 = vmor %vm218_vm1, %vm217_vm0  ;;  %s1645_s17 = sshll.u32 %s2207_s16, 4  ;;  %vm320_vm4 = vcmask 23552   ;;  %vm478_vm5 = vcmask 15360   ;;  %vm238_vm6 = vcmask 7168   ;;  %s206_s5 = scalar_lea.vmem %s2198_s1, %s2207_s16 }
   0xd   : > { %216 = vst [vmem:[#allocation2 + $0x24] sm:$0xf] %v1749_v0  ;;  %1716 = vset.pattern.permute.xlu2 %v1749_v0  ;;  %s203_s20 = scalar_lea.vmem %s2197_s0, %s1645_s17  ;;  %v1655_v37 = vld [vmem:[%s2199_s2 + $0x20] sm:$0xff]  ;;  %v1657_v38 = vld [vmem:[%s2199_s2 + $0x30] sm:$0xff]  ;;  %vm325_vm7 = vcmask 261120   ;;  %v1658_v39 = vld [vmem:[%s2199_s2 + $0x38] sm:$0xff] }
   0xe   : > { %213 = vst [vmem:[#allocation2] sm:$0xf] %v1749_v0  ;;  %v228_v2 = vld [vmem:[%s203_s20] sm:$0xf]  ;;  %v229_v3 = vld [vmem:[%s203_s20 + $0x4] sm:$0xf] }
   0xf   : > { %214 = vst [vmem:[#allocation2 + $0xc] sm:$0xf] %v1749_v0  ;;  %v230_v5 = vld [vmem:[%s203_s20 + $0x8] sm:$0xf]  ;;  %v231_v7 = vld [vmem:[%s203_s20 + $0xc] sm:$0xf] }
  0x10   : > { %220 = vst.msk [vmem:[#allocation2 + $0x4] sm:$0xff] %vm1797_vm2, %v1749_v0  ;;  %vm395_vm8 = vcmask 31744   ;;  %v1669_v51 = vld [vmem:[%s2199_s2 + $0x80] sm:$0xff]  ;;  %v1670_v61 = vld [vmem:[%s2199_s2 + $0x88] sm:$0xff]  ;;  %vm1065_vm11 = vcmask 130048   ;;  %s1646_s6 = sshll.u32 %s2207_s16, 6 }
  0x11   : > { %221 = vst.msk [vmem:[#allocation2 + $0x10] sm:$0xff] %vm1797_vm2, %v1749_v0  ;;  %v1659_v52 = vld [vmem:[%s2199_s2 + $0x40] sm:$0xff]  ;;  %v1660_v62 = vld [vmem:[%s2199_s2 + $0x48] sm:$0xff]  ;;  %s2148_s16 = scalar_lea.vmem %s2201_s4, %s1646_s6 }
  0x12   : > { %222 = vst.msk [vmem:[#allocation2 + $0x1c] sm:$0xff] %vm1797_vm2, %v1749_v0  ;;  %v1663_v53 = vld [vmem:[%s2199_s2 + $0x60] sm:$0xff]  ;;  %v1664_v63 = vld [vmem:[%s2199_s2 + $0x68] sm:$0xff] }
  0x13   : > { %v1409_v4 = vld [vmem:[#allocation2 + $0x18] sm:$0xf]  ;;  %233 = vst.msk [vmem:[#allocation2 + $0x4] sm:$0xf] %vm232_vm3, %v228_v2  ;;  %v1651_v57 = vld [vmem:[%s2199_s2] sm:$0xff] }
  0x14   : > { %v1650_v6 = vld [vmem:[#allocation2 + $0x20] sm:$0xf0]  ;;  %234 = vst.msk [vmem:[#allocation2 + $0x10] sm:$0xf] %vm232_vm3, %v229_v3  ;;  %v1652_v3 = vld [vmem:[%s2199_s2 + $0x8] sm:$0xff] }
  0x15   : > { %v1410_v8 = vor.u32 %v1650_v6, %v1409_v4  ;;  %v1401_v9 = vld [vmem:[#allocation2] sm:$0xf]  ;;  %223 = vst.msk [vmem:[#allocation2 + $0x28] sm:$0xff] %vm1797_vm2, %v1749_v0  ;;  %v1661_v6 = vld [vmem:[%s2199_s2 + $0x50] sm:$0xff] }
  0x16   : > { %v1648_v10 = vld [vmem:[#allocation2 + $0x8] sm:$0xf0]  ;;  %235 = vst.msk [vmem:[#allocation2 + $0x1c] sm:$0xf] %vm232_vm3, %v230_v5  ;;  %v1671_v5 = vld [vmem:[%s2199_s2 + $0x90] sm:$0xff] }
  0x17   : > { %316 = vrot.lane.b32.xlu0 %v1410_v8, %s1750_s21  ;;  %v1402_v11 = vor.u32 %v1648_v10, %v1401_v9  ;;  %474 = vrot.lane.b32.xlu2 %v1410_v8, %s1751_s22  ;;  %236 = vst.msk [vmem:[#allocation2 + $0x28] sm:$0xf] %vm232_vm3, %v231_v7  ;;  %v1665_v7 = vld [vmem:[%s2199_s2 + $0x70] sm:$0xff]  ;;  %v1672_v9 = vld [vmem:[%s2199_s2 + $0x98] sm:$0xff] }
  0x18   : > { %v1662_v10 = vld [vmem:[%s2199_s2 + $0x58] sm:$0xff] }
  0x19   : > { %312 = vrot.lane.b32.xlu1 %v1402_v11, %s1750_s21 }
  0x1a   : > { %v1647_v12 = vld [vmem:[#allocation2 + $0x4] sm:$0xf] }
  0x1b   : > { %v1403_v13 = vld [vmem:[#allocation2 + $0xc] sm:$0xf0]  ;;  %v1521_v21 = vld [vmem:[#allocation2 + $0x4] sm:$0xf] }
  0x1c   : > { %v1406_v14 = vor.u32 %v1647_v12, %v1403_v13  ;;  %v1667_v22 = vld [vmem:[#allocation2 + $0xc] sm:$0xf0]  ;;  %v1654_v12 = vld [vmem:[%s2199_s2 + $0x18] sm:$0xff]  ;;  %v1685_v13 = vld [vmem:[%s2199_s2 + $0x100] sm:$0xff] }
  0x1d   : > { %v1649_v15 = vld [vmem:[#allocation2 + $0x1c] sm:$0xf]  ;;  %v1522_v23 = vor.u32 %v1667_v22, %v1521_v21  ;;  %v1687_v21 = vld [vmem:[%s2199_s2 + $0x110] sm:$0xff] }
  0x1e   : > { %v1411_v16 = vld [vmem:[#allocation2 + $0x24] sm:$0xf0]  ;;  %v1525_v18 = vld [vmem:[#allocation2 + $0x1c] sm:$0xf]  ;;  %v1679_v22 = vld [vmem:[%s2199_s2 + $0xd0] sm:$0xff] }
  0x1f   : > { %565 = vrot.lane.b32.xlu0 %v1410_v8, %s1752_s23  ;;  %391 = vrot.lane.b32.xlu2 %v1410_v8, %s1753_s24  ;;  %v1414_v17 = vor.u32 %v1649_v15, %v1411_v16  ;;  %v1668_v19 = vld [vmem:[#allocation2 + $0x24] sm:$0xf0]  ;;  %v1653_v8 = vld [vmem:[%s2199_s2 + $0x10] sm:$0xff]  ;;  %v1681_v15 = vld [vmem:[%s2199_s2 + $0xe0] sm:$0xff] }
  0x20   : > { %v1526_v20 = vor.u32 %v1668_v19, %v1525_v18  ;;  %v1673_v16 = vld [vmem:[%s2199_s2 + $0xa0] sm:$0xff]  ;;  %v1678_v18 = vld [vmem:[%s2199_s2 + $0xc8] sm:$0xff] }
  0x21   : > { %314 = vrot.lane.b32.xlu1 %v1406_v14, %s1750_s21  ;;  %v1682_v19 = vld [vmem:[%s2199_s2 + $0xe8] sm:$0xff] }
  0x27   : > { %318 = vrot.lane.b32.xlu0 %v1414_v17, %s1750_s21  ;;  %476 = vrot.lane.b32.xlu2 %v1414_v17, %s1751_s22 }
  0x29   : > { %567 = vrot.lane.b32.xlu1 %v1414_v17, %s1752_s23 }
  0x2f   : > { %393 = vrot.lane.b32.xlu0 %v1414_v17, %s1753_s24  ;;  %472 = vrot.lane.b32.xlu2 %v1406_v14, %s1751_s22  ;;  %v1686_v17 = vld [vmem:[%s2199_s2 + $0x108] sm:$0xff] }
  0x31   : > { %470 = vrot.lane.b32.xlu1 %v1402_v11, %s1751_s22 }
  0x37   : > { %561 = vrot.lane.b32.xlu0 %v1402_v11, %s1752_s23  ;;  %387 = vrot.lane.b32.xlu2 %v1402_v11, %s1753_s24  ;;  %v1666_v11 = vld [vmem:[%s2199_s2 + $0x78] sm:$0xff] }
  0x39   : > { %563 = vrot.lane.b32.xlu1 %v1406_v14, %s1752_s23 }
  0x3f   : > { %389 = vrot.lane.b32.xlu0 %v1406_v14, %s1753_s24  ;;  %916 = vrot.lane.b32.xlu2 %v1526_v20, %s1754_s25  ;;  %v1677_v14 = vld [vmem:[%s2199_s2 + $0xc0] sm:$0xff] }
  0x41   : > { %832 = vrot.lane.b32.xlu1 %v1526_v20, %s1755_s26 }
  0x47   : > { %748 = vrot.lane.b32.xlu0 %v1526_v20, %s1756_s27  ;;  %914 = vrot.lane.b32.xlu2 %v1522_v23, %s1754_s25 }
  0x49   : > { %830 = vrot.lane.b32.xlu1 %v1522_v23, %s1755_s26 }
  0x4f   : > { %746 = vrot.lane.b32.xlu0 %v1522_v23, %s1756_s27  ;;  %998 = vrot.lane.b32.xlu2 %v1522_v23, %s1757_s28 }
  0x51   : > { %1000 = vrot.lane.b32.xlu1 %v1526_v20, %s1757_s28 }
  0x71   : > { %v475_v24 = vpop.permute.xlu2 %474 }
  0x79   : > { %v392_v26 = vpop.permute.xlu2 %391 }
  0x81   : > { %v477_v30 = vpop.permute.xlu2 %476 }
  0x82   : > { %v480_v40 = vsel %vm478_vm5, %v475_v24, %v477_v30  ;;  %v1675_v24 = vld [vmem:[%s2199_s2 + $0xb0] sm:$0xff]  ;;  %v1676_v30 = vld [vmem:[%s2199_s2 + $0xb8] sm:$0xff] }
  0x89   : > { %v317_v25 = vpop.permute.xlu0 %316  ;;  %v473_v34 = vpop.permute.xlu2 %472 }
  0x8b   : > { %v313_v27 = vpop.permute.xlu1 %312 }
  0x91   : > { %v566_v28 = vpop.permute.xlu0 %565  ;;  %v388_v46 = vpop.permute.xlu2 %387 }
  0x93   : > { %v315_v29 = vpop.permute.xlu1 %314 }
  0x94   : > { %v321_v35 = vsel %vm320_vm4, %v313_v27, %v315_v29  ;;  %v1684_v27 = vld [vmem:[%s2199_s2 + $0xf8] sm:$0xff] }
  0x99   : > { %v319_v31 = vpop.permute.xlu0 %318  ;;  %v917_v50 = vpop.permute.xlu2 %916 }
  0x9a   : > { %v322_v32 = vsel %vm320_vm4, %v317_v25, %v319_v31  ;;  %v1688_v25 = vld [vmem:[%s2199_s2 + $0x118] sm:$0xff] }
  0x9b   : > { %v568_v33 = vpop.permute.xlu1 %567  ;;  %344 = vmatpush.bf16.msra.mxu0 %v322_v32  ;;  %1689 = vmatpush.bf16.msra.mxu1 %v322_v32 }
  0x9c   : > { %1690 = vmatpush.bf16.msra.mxu2 %v322_v32  ;;  %1691 = vmatpush.bf16.msra.mxu3 %v322_v32  ;;  %v571_v41 = vsel %vm238_vm6, %v566_v28, %v568_v33 }
  0x9f   : > { %345 = vmatpush.bf16.msra.mxu0 %v321_v35  ;;  %1692 = vmatpush.bf16.msra.mxu1 %v321_v35 }
  0xa0   : > { %1693 = vmatpush.bf16.msra.mxu2 %v321_v35  ;;  %1694 = vmatpush.bf16.msra.mxu3 %v321_v35 }
  0xa1   : > { %v394_v42 = vpop.permute.xlu0 %393  ;;  %v915_v58 = vpop.permute.xlu2 %914 }
  0xa2   : > { %v397_v43 = vsel %vm395_vm8, %v392_v26, %v394_v42  ;;  %1416 = vmatmul.msk.bf16.vlgmr.msra.gmra.mxu1 %vm325_vm7, %v1656_v36  ;;  %1415 = vmatmul.msk.bf16.vlgmr.msra.gmra.mxu0 %vm325_vm7, %v1655_v37  ;;  %v1680_v26 = vld [vmem:[%s2199_s2 + $0xd8] sm:$0xff] }
  0xa3   : > { %v471_v44 = vpop.permute.xlu1 %470  ;;  %1417 = vmatmul.msk.bf16.vlgmr.msra.gmra.mxu2 %vm325_vm7, %v1657_v38  ;;  %1418 = vmatmul.msk.bf16.vlgmr.msra.gmra.mxu3 %vm325_vm7, %v1658_v39 }
  0xa4   : > { %501 = vmatpush.bf16.msrb.mxu2 %v480_v40  ;;  %592 = vmatpush.bf16.msrb.mxu3 %v571_v41  ;;  %v479_v45 = vsel %vm478_vm5, %v471_v44, %v473_v34 }
  0xa5   : > { %418 = vmatpush.bf16.msrb.mxu1 %v397_v43  ;;  %686 = vmatpush.bf16.msrb.mxu0 %v1526_v20  ;;  %v1674_v20 = vld [vmem:[%s2199_s2 + $0xa8] sm:$0xff] }
  0xa8   : > { %502 = vmatpush.bf16.msrb.mxu2 %v479_v45 }
  0xa9   : > { %687 = vmatpush.bf16.msrb.mxu0 %v1522_v23  ;;  %v562_v47 = vpop.permute.xlu0 %561  ;;  %v999_v4 = vpop.permute.xlu2 %998  ;;  %v1683_v23 = vld [vmem:[%s2199_s2 + $0xf0] sm:$0xff] }
  0xab   : > { %v564_v48 = vpop.permute.xlu1 %563 }
  0xac   : > { %v570_v49 = vsel %vm238_vm6, %v562_v47, %v564_v48 }
  0xad   : > { %593 = vmatpush.bf16.msrb.mxu3 %v570_v49 }
  0xb1   : > { %938 = vmatpush.bf16.msra.mxu3 %v917_v50  ;;  %v390_v54 = vpop.permute.xlu0 %389 }
  0xb2   : > { %v396_v55 = vsel %vm395_vm8, %v388_v46, %v390_v54  ;;  %1527 = vmatmul.msk.bf16.vlgmr.msrb.gmra.mxu0 %vm325_vm7, %v1669_v51 }
  0xb3   : > { %v833_v56 = vpop.permute.xlu1 %832  ;;  %1463 = vmatmul.msk.bf16.vlgmr.msrb.gmra.mxu2 %vm325_vm7, %v1659_v52  ;;  %1491 = vmatmul.msk.bf16.vlgmr.msrb.gmra.mxu3 %vm325_vm7, %v1663_v53 }
  0xb4   : > { %854 = vmatpush.bf16.msra.mxu2 %v833_v56  ;;  %419 = vmatpush.bf16.msrb.mxu1 %v396_v55 }
  0xb5   : > { %939 = vmatpush.bf16.msra.mxu3 %v915_v58 }
  0xb7   : > { %1435 = vmatmul.msk.bf16.vlgmr.msrb.gmra.mxu1 %vm325_vm7, %v1651_v57 }
  0xb9   : > { %v749_v59 = vpop.permute.xlu0 %748 }
  0xba   : > { %770 = vmatpush.bf16.msra.mxu1 %v749_v59 }
  0xbb   : > { %v831_v60 = vpop.permute.xlu1 %830 }
  0xbc   : > { %855 = vmatpush.bf16.msra.mxu2 %v831_v60 }
  0xc1   : > { %v747_v1 = vpop.permute.xlu0 %746 }
  0xc2   : > { %1528 = vmatmul.msk.bf16.gmra.mxu0 %vm325_vm7, %v1670_v61  ;;  %771 = vmatpush.bf16.msra.mxu1 %v747_v1 }
  0xc3   : > { %v1001_v2 = vpop.permute.xlu1 %1000  ;;  %1464 = vmatmul.msk.bf16.gmra.mxu2 %vm325_vm7, %v1660_v62  ;;  %1492 = vmatmul.msk.bf16.gmra.mxu3 %vm325_vm7, %v1664_v63 }
  0xc4   : > { %1022 = vmatpush.bf16.msra.mxu0 %v1001_v2 }
  0xc7   : > { %1436 = vmatmul.msk.bf16.gmra.mxu1 %vm325_vm7, %v1652_v3 }
  0xc8   : > { %1023 = vmatpush.bf16.msra.mxu0 %v999_v4 }
  0xd2   : > { %1529 = vmatmul.msk.bf16.gmra.mxu0 %vm325_vm7, %v1671_v5 }
  0xd3   : > { %1465 = vmatmul.msk.bf16.gmra.mxu2 %vm325_vm7, %v1661_v6  ;;  %1493 = vmatmul.msk.bf16.gmra.mxu3 %vm325_vm7, %v1665_v7 }
  0xd7   : > { %1437 = vmatmul.msk.bf16.gmra.mxu1 %vm325_vm7, %v1653_v8 }
  0xe2   : > { %1530 = vmatmul.msk.bf16.gmra.mxu0 %vm325_vm7, %v1672_v9 }
  0xe3   : > { %1466 = vmatmul.msk.bf16.gmra.mxu2 %vm325_vm7, %v1662_v10  ;;  %1494 = vmatmul.msk.bf16.gmra.mxu3 %vm325_vm7, %v1666_v11 }
  0xe7   : > { %1438 = vmatmul.msk.bf16.gmra.mxu1 %vm325_vm7, %v1654_v12 }
  0xf2   : > { %1639 = vmatmul.msk.bf16.vlgmr.msra.gmra.mxu0 %vm325_vm7, %v1685_v13 }
  0xf3   : > { %1583 = vmatmul.msk.bf16.vlgmr.msra.gmra.mxu2 %vm325_vm7, %v1677_v14  ;;  %1611 = vmatmul.msk.bf16.vlgmr.msra.gmra.mxu3 %vm325_vm7, %v1681_v15 }
  0xf7   : > { %1555 = vmatmul.msk.bf16.vlgmr.msra.gmra.mxu1 %vm325_vm7, %v1673_v16 }
 0x102   : > { %1640 = vmatmul.msk.bf16.gmra.mxu0 %vm325_vm7, %v1686_v17 }
 0x103   : > { %1584 = vmatmul.msk.bf16.gmra.mxu2 %vm325_vm7, %v1678_v18  ;;  %1612 = vmatmul.msk.bf16.gmra.mxu3 %vm325_vm7, %v1682_v19 }
 0x107   : > { %1556 = vmatmul.msk.bf16.gmra.mxu1 %vm325_vm7, %v1674_v20 }
 0x112   : > { %1641 = vmatmul.msk.bf16.gmra.mxu0 %vm325_vm7, %v1687_v21 }
 0x113   : > { %1585 = vmatmul.msk.bf16.gmra.mxu2 %vm325_vm7, %v1679_v22  ;;  %1613 = vmatmul.msk.bf16.gmra.mxu3 %vm325_vm7, %v1683_v23 }
 0x117   : > { %1557 = vmatmul.msk.bf16.gmra.mxu1 %vm325_vm7, %v1675_v24 }
 0x11f   : > { %v347_v28 = vpop.f32.mrf.mxu0  ;;  %v352_v29 = vpop.f32.mrf.mxu1 }
 0x122   : > { %1642 = vmatmul.msk.bf16.gmra.mxu0 %vm325_vm7, %v1688_v25 }
 0x123   : > { %1586 = vmatmul.msk.bf16.gmra.mxu2 %vm325_vm7, %v1680_v26  ;;  %1614 = vmatmul.msk.bf16.gmra.mxu3 %vm325_vm7, %v1684_v27 }
 0x126   : > { %v1975_v31 = vpop.f32.mrf.mxu2  ;;  %v1977_v32 = vpop.f32.mrf.mxu3 }
 0x127   : > { %1558 = vmatmul.msk.bf16.gmra.mxu1 %vm325_vm7, %v1676_v30  ;;  %v349_v33 = vpop.f32.mrf.mxu0  ;;  %v354_v34 = vpop.f32.mrf.mxu1 }
 0x12e   : > { %v1980_v35 = vpop.f32.mrf.mxu2  ;;  %v1982_v36 = vpop.f32.mrf.mxu3 }
 0x12f   : > { %v689_v37 = vpop.f32.mrf.mxu0 }
 0x134   : > { %v421_v38 = vpop.f32.mrf.mxu1 }
 0x135   : > { %v422_v39 = vadd.f32 %v421_v38, %v347_v28 }
 0x136   : > { %v504_v40 = vpop.f32.mrf.mxu2  ;;  %v595_v41 = vpop.f32.mrf.mxu3 }
 0x137   : > { %v524_v42 = vadd.f32 %v504_v40, %v422_v39  ;;  %v691_v43 = vpop.f32.mrf.mxu0 }
 0x139   : > { %v615_v44 = vadd.f32 %v595_v41, %v524_v42 }
 0x13b   : > { %v709_v45 = vadd.f32 %v689_v37, %v615_v44 }
 0x13c   : > { %v423_v46 = vpop.f32.mrf.mxu1 }
 0x13d   : > { %v424_v47 = vadd.f32 %v423_v46, %v349_v33 }
 0x13e   : > { %v506_v48 = vpop.f32.mrf.mxu2  ;;  %v597_v49 = vpop.f32.mrf.mxu3 }
 0x13f   : > { %v525_v50 = vadd.f32 %v506_v48, %v424_v47  ;;  %v694_v51 = vpop.f32.mrf.mxu0 }
 0x141   : > { %v616_v52 = vadd.f32 %v597_v49, %v525_v50 }
 0x143   : > { %v710_v53 = vadd.f32 %v691_v43, %v616_v52 }
 0x144   : > { %v426_v54 = vpop.f32.mrf.mxu1 }
 0x145   : > { %v427_v55 = vadd.f32 %v426_v54, %v352_v29 }
 0x146   : > { %v509_v56 = vpop.f32.mrf.mxu2  ;;  %v600_v57 = vpop.f32.mrf.mxu3 }
 0x147   : > { %v526_v58 = vadd.f32 %v509_v56, %v427_v55  ;;  %v696_v59 = vpop.f32.mrf.mxu0  ;;  %v237_v55 = vld [vmem:[%s206_s5] sm:$0x1] }
 0x148   : > { %vm1053_vm9 = vcmp.gt.f32.partialorder %v237_v55, 0.5 }
 0x149   : > { %v617_v60 = vadd.f32 %v600_v57, %v526_v58 }
 0x14b   : > { %v711_v61 = vadd.f32 %v694_v51, %v617_v60 }
 0x14c   : > { %v428_v62 = vpop.f32.mrf.mxu1 }
 0x14d   : > { %v429_v63 = vadd.f32 %v428_v62, %v354_v34 }
 0x14e   : > { %v511_v1 = vpop.f32.mrf.mxu2  ;;  %v602_v2 = vpop.f32.mrf.mxu3 }
 0x14f   : > { %v527_v3 = vadd.f32 %v511_v1, %v429_v63  ;;  %v699_v4 = vpop.f32.mrf.mxu0 }
 0x151   : > { %v618_v5 = vadd.f32 %v602_v2, %v527_v3  ;;  %v1054_v2 = vsel %vm1053_vm9, 1, %v1749_v0 }
 0x153   : > { %v712_v6 = vadd.f32 %v696_v59, %v618_v5 }
 0x154   : > { %v431_v7 = vpop.f32.mrf.mxu1 }
 0x155   : > { %v432_v47 = vadd.f32 %v431_v7, %v1975_v31 }
 0x156   : > { %v514_v8 = vpop.f32.mrf.mxu2  ;;  %v605_v9 = vpop.f32.mrf.mxu3 }
 0x157   : > { %v1984_v10 = vpop.f32.mrf.mxu0  ;;  %v528_v51 = vadd.f32 %v514_v8, %v432_v47  ;;  %v1055_v8 = vperm.slane %v1054_v2, 0 }
 0x159   : > { %v619_v58 = vadd.f32 %v605_v9, %v528_v51  ;;  %vm2018_vm10 = vcmp.eq.s32.totalorder %v1055_v8, 1 }
 0x15c   : > { %v433_v11 = vpop.f32.mrf.mxu1 }
 0x15d   : > { %v434_v59 = vadd.f32 %v433_v11, %v1980_v35  ;;  %v1758_v35 = vmov -inf  }
 0x15e   : > { %v516_v12 = vpop.f32.mrf.mxu2  ;;  %v607_v13 = vpop.f32.mrf.mxu3  ;;  %239 = vst.msk [vmem:[#allocation3] sm:$0xff] %vm238_vm6, %v1758_v35 }
 0x15f   : > { %v1986_v14 = vpop.f32.mrf.mxu0  ;;  %v529_v62 = vadd.f32 %v516_v12, %v434_v59  ;;  %240 = vst.msk [vmem:[#allocation3 + $0x8] sm:$0xff] %vm238_vm6, %v1758_v35 }
 0x160   : > { %241 = vst.msk [vmem:[#allocation3 + $0x10] sm:$0xff] %vm238_vm6, %v1758_v35 }
 0x161   : > { %242 = vst.msk [vmem:[#allocation3 + $0x18] sm:$0xff] %vm238_vm6, %v1758_v35 }
 0x162   : > { %251 = vst.msk [vmem:[#allocation6] sm:$0xff] %vm238_vm6, %v1758_v35 }
 0x163   : > { %252 = vst.msk [vmem:[#allocation6 + $0x8] sm:$0xff] %vm238_vm6, %v1758_v35 }
 0x164   : > { %v436_v15 = vpop.f32.mrf.mxu1  ;;  %253 = vst.msk [vmem:[#allocation6 + $0x10] sm:$0xff] %vm238_vm6, %v1758_v35 }
 0x165   : > { %v437_v9 = vadd.f32 %v436_v15, %v1977_v32  ;;  %254 = vst.msk [vmem:[#allocation6 + $0x18] sm:$0xff] %vm238_vm6, %v1758_v35  ;;  %v2066_v59 = vld [vmem:[#allocation3] sm:$0xff] }
 0x166   : > { %v1988_v16 = vpop.f32.mrf.mxu2  ;;  %v1990_v17 = vpop.f32.mrf.mxu3 }
 0x167   : > { %v1992_v18 = vpop.f32.mrf.mxu0  ;;  %v530_v12 = vadd.f32 %v1988_v16, %v437_v9 }
 0x169   : > { %v621_v16 = vadd.f32 %v1990_v17, %v530_v12 }
 0x16c   : > { %v1994_v19 = vpop.f32.mrf.mxu1 }
 0x16e   : > { %v1996_v20 = vpop.f32.mrf.mxu2  ;;  %v1998_v21 = vpop.f32.mrf.mxu3 }
 0x16f   : > { %v1025_v22 = vpop.f32.mrf.mxu0 }
 0x174   : > { %v773_v23 = vpop.f32.mrf.mxu1 }
 0x175   : > { %v793_v24 = vadd.f32 %v773_v23, %v709_v45 }
 0x176   : > { %v857_v25 = vpop.f32.mrf.mxu2  ;;  %v941_v26 = vpop.f32.mrf.mxu3 }
 0x177   : > { %v877_v27 = vadd.f32 %v857_v25, %v793_v24  ;;  %v1027_v28 = vpop.f32.mrf.mxu0 }
 0x179   : > { %v961_v29 = vadd.f32 %v941_v26, %v877_v27 }
 0x17b   : > { %v2000_v30 = vadd.f32 %v1025_v22, %v961_v29  ;;  %v620_v22 = vadd.f32 %v607_v13, %v529_v62  ;;  %v2076_v62 = vld [vmem:[#allocation3 + $0x8] sm:$0xff] }
 0x17c   : > { %v775_v33 = vpop.f32.mrf.mxu1 }
 0x17d   : > { %v794_v34 = vadd.f32 %v775_v33, %v710_v53  ;;  %v714_v0 = vadd.f32 %v1984_v10, %v620_v22  ;;  %v2087_v22 = vld [vmem:[#allocation3 + $0x18] sm:$0xff] }
 0x17e   : > { %v859_v37 = vpop.f32.mrf.mxu2  ;;  %v943_v38 = vpop.f32.mrf.mxu3 }
 0x17f   : > { %v878_v39 = vadd.f32 %v859_v37, %v794_v34  ;;  %v1030_v40 = vpop.f32.mrf.mxu0  ;;  %v715_v34 = vadd.f32 %v1986_v14, %v621_v16 }
 0x181   : > { %v962_v41 = vadd.f32 %v943_v38, %v878_v39 }
 0x183   : > { %v2002_v42 = vadd.f32 %v1027_v28, %v962_v41  ;;  %v439_v28 = vadd.f32 %v1994_v19, %v1982_v36 }
 0x184   : > { %v778_v43 = vpop.f32.mrf.mxu1 }
 0x185   : > { %v795_v44 = vadd.f32 %v778_v43, %v711_v61  ;;  %v713_v61 = vadd.f32 %v699_v4, %v619_v58  ;;  %v531_v37 = vadd.f32 %v1996_v20, %v439_v28  ;;  %v1759_v58 = vmov 0.0  }
 0x186   : > { %v862_v45 = vpop.f32.mrf.mxu2  ;;  %v946_v46 = vpop.f32.mrf.mxu3  ;;  %245 = vst.msk [vmem:[#allocation4 + $0x10] sm:$0xff] %vm238_vm6, %v1759_v58 }
 0x187   : > { %v879_v48 = vadd.f32 %v862_v45, %v795_v44  ;;  %v1032_v50 = vpop.f32.mrf.mxu0  ;;  %v622_v19 = vadd.f32 %v1998_v21, %v531_v37  ;;  %243 = vst.msk [vmem:[#allocation4] sm:$0xff] %vm238_vm6, %v1759_v58  ;;  %v1197_v37 = vsel %vm1065_vm11, %v2002_v42, -inf }
 0x188   : > { %244 = vst.msk [vmem:[#allocation4 + $0x8] sm:$0xff] %vm238_vm6, %v1759_v58 }
 0x189   : > { %v963_v49 = vadd.f32 %v946_v46, %v879_v48  ;;  %v716_v20 = vadd.f32 %v1992_v18, %v622_v19  ;;  %246 = vst.msk [vmem:[#allocation4 + $0x18] sm:$0xff] %vm238_vm6, %v1759_v58 }
 0x18a   : > { %247 = vst.msk [vmem:[#allocation5] sm:$0xff] %vm238_vm6, %v1759_v58 }
 0x18b   : > { %v2009_v52 = vadd.f32 %v1030_v40, %v963_v49  ;;  %248 = vst.msk [vmem:[#allocation5 + $0x8] sm:$0xff] %vm238_vm6, %v1759_v58 }
 0x18c   : > { %v780_v53 = vpop.f32.mrf.mxu1  ;;  %249 = vst.msk [vmem:[#allocation5 + $0x10] sm:$0xff] %vm238_vm6, %v1759_v58 }
 0x18d   : > { %v796_v54 = vadd.f32 %v780_v53, %v712_v6  ;;  %250 = vst.msk [vmem:[#allocation5 + $0x18] sm:$0xff] %vm238_vm6, %v1759_v58 }
 0x18e   : > { %v864_v56 = vpop.f32.mrf.mxu2  ;;  %v948_v57 = vpop.f32.mrf.mxu3 }
 0x18f   : > { %v880_v60 = vadd.f32 %v864_v56, %v796_v54  ;;  %v1035_v1 = vpop.f32.mrf.mxu0 }
 0x191   : > { %v964_v31 = vadd.f32 %v948_v57, %v880_v60 }
 0x193   : > { %v2012_v63 = vadd.f32 %v1032_v50, %v964_v31 }
 0x194   : > { %v783_v3 = vpop.f32.mrf.mxu1 }
 0x195   : > { %v797_v5 = vadd.f32 %v783_v3, %v713_v61 }
 0x196   : > { %v867_v7 = vpop.f32.mrf.mxu2  ;;  %v951_v6 = vpop.f32.mrf.mxu3 }
 0x197   : > { %v881_v23 = vadd.f32 %v867_v7, %v797_v5  ;;  %v1037_v25 = vpop.f32.mrf.mxu0  ;;  %v1063_v5 = vld [vmem:[#allocation3 + $0x10] sm:$0xff] }
 0x199   : > { %v965_v11 = vadd.f32 %v951_v6, %v881_v23 }
 0x19b   : > { %v1049_v13 = vadd.f32 %v1035_v1, %v965_v11 }
 0x19c   : > { %v785_v32 = vpop.f32.mrf.mxu1 }
 0x19d   : > { %v798_v15 = vadd.f32 %v785_v32, %v714_v0  ;;  %v2029_v24 = vsel %vm2018_vm10, %v1049_v13, -1e+09 }
 0x19e   : > { %v869_v26 = vpop.f32.mrf.mxu2  ;;  %v953_v27 = vpop.f32.mrf.mxu3  ;;  %v1066_v10 = vsel %vm1065_vm11, %v2029_v24, -inf }
 0x19f   : > { %v882_v29 = vadd.f32 %v869_v26, %v798_v15  ;;  %1067 = vmax.xlane.f32.xlu0 %v1066_v10  ;;  %v1040_v45 = vpop.f32.mrf.mxu0 }
 0x1a1   : > { %v966_v33 = vadd.f32 %v953_v27, %v882_v29 }
 0x1a3   : > { %v1050_v38 = vadd.f32 %v1037_v25, %v966_v33 }
 0x1a4   : > { %v788_v39 = vpop.f32.mrf.mxu1 }
 0x1a5   : > { %v799_v40 = vadd.f32 %v788_v39, %v715_v34  ;;  %v2043_v41 = vsel %vm2018_vm10, %v1050_v38, -1e+09 }
 0x1a6   : > { %v872_v17 = vpop.f32.mrf.mxu2  ;;  %v956_v43 = vpop.f32.mrf.mxu3  ;;  %v1069_v36 = vsel %vm1065_vm11, %v2043_v41, -inf }
 0x1a7   : > { %v883_v44 = vadd.f32 %v872_v17, %v799_v40  ;;  %1070 = vmax.xlane.f32.xlu1 %v1069_v36  ;;  %v1042_v21 = vpop.f32.mrf.mxu0 }
 0x1a9   : > { %v967_v14 = vadd.f32 %v956_v43, %v883_v44 }
 0x1ab   : > { %v1051_v46 = vadd.f32 %v1040_v45, %v967_v14 }
 0x1ac   : > { %v790_v47 = vpop.f32.mrf.mxu1 }
 0x1ad   : > { %v800_v48 = vadd.f32 %v790_v47, %v716_v20  ;;  %v1059_v49 = vsel %vm2018_vm10, %v1051_v46, -1e+09  ;;  %v1200_v20 = vsel %vm1065_vm11, %v2009_v52, -inf  ;;  %v1194_v46 = vsel %vm1065_vm11, %v2000_v30, -inf }
 0x1ae   : > { %v874_v50 = vpop.f32.mrf.mxu2  ;;  %v1072_v51 = vsel %vm1065_vm11, %v1059_v49, -inf  ;;  %v958_v54 = vpop.f32.mrf.mxu3  ;;  %v1203_v47 = vsel %vm1065_vm11, %v2012_v63, -inf }
 0x1af   : > { %v884_v53 = vadd.f32 %v874_v50, %v800_v48  ;;  %1073 = vmax.xlane.f32.xlu2 %v1072_v51  ;;  %v1128_v50 = vld [vmem:[#allocation4 + $0x10] sm:$0xff] }
 0x1b1   : > { %v968_v55 = vadd.f32 %v958_v54, %v884_v53  ;;  %v1156_v54 = vld [vmem:[#allocation5 + $0x10] sm:$0xff] }
 0x1b3   : > { %v1052_v56 = vadd.f32 %v1042_v21, %v968_v55  ;;  %v1126_v55 = vld [vmem:[#allocation4] sm:$0xff] }
 0x1b5   : > { %v2054_v57 = vsel %vm2018_vm10, %v1052_v56, -1e+09 }
 0x1b6   : > { %v1075_v18 = vsel %vm1065_vm11, %v2054_v57, -inf }
 0x1b7   : > { %1076 = vmax.xlane.f32.xlu2 %v1075_v18 }
 0x212   : > { %v1068_v60 = vpop.xlane.xlu0 %1067 }
 0x213   : > { %v2069_v31 = vmax.f32 %v2066_v59, %v1068_v60 }
 0x215   : > { %v1082_v61 = vsub.f32 %v2066_v59, %v2069_v31  ;;  %1186 = vst.msk [vmem:[#allocation3] sm:$0xff] %vm238_vm6, %v2069_v31  ;;  %1096 = vperm.xlu0 %1714, %v2069_v31  }
 0x21a   : > { %v1071_v1 = vpop.xlane.xlu1 %1070 }
 0x21b   : > { %v2079_v2 = vmax.f32 %v2076_v62, %v1071_v1 }
 0x21d   : > { %v1083_v3 = vsub.f32 %v2076_v62, %v2079_v2  ;;  %1187 = vst.msk [vmem:[#allocation3 + $0x8] sm:$0xff] %vm238_vm6, %v2079_v2  ;;  %1101 = vperm.xlu1 %1715, %v2079_v2   ;;  %v1191_v62 = vld [vmem:[#allocation6 + $0x8] sm:$0xff] }
 0x222   : > { %v1074_v7 = vpop.xlane.xlu2 %1073 }
 0x223   : > { %v1080_v6 = vmax.f32 %v1063_v5, %v1074_v7 }
 0x225   : > { %v1084_v8 = vsub.f32 %v1063_v5, %v1080_v6  ;;  %1188 = vst.msk [vmem:[#allocation3 + $0x10] sm:$0xff] %vm238_vm6, %v1080_v6  ;;  %1106 = vperm.xlu2 %1716, %v1080_v6  }
 0x227   : > { %v1090_v48 = vmul.f32 1.442695, %v1084_v8 }
 0x22a   : > { %v1077_v9 = vpop.xlane.xlu2 %1076 }
 0x22b   : > { %v2090_v23 = vmax.f32 %v2087_v22, %v1077_v9 }
 0x22d   : > { %v1085_v35 = vsub.f32 %v2087_v22, %v2090_v23  ;;  %1189 = vst.msk [vmem:[#allocation3 + $0x18] sm:$0xff] %vm238_vm6, %v2090_v23  ;;  %1111 = vperm.xlu1 %1715, %v2090_v23  }
 0x22f   : > { %v1092_v8 = vmul.f32 1.442695, %v1085_v35  ;;  %v2141_v35 = vld [vmem:[%s2200_s3 + $0x8] sm:$0xff] }
 0x27f   : > { %v1107_v11 = vpop.permute.xlu2 %1106 }
 0x280   : > { %v1116_v4 = vsub.f32 %v1059_v49, %v1107_v11 }
 0x282   : > { %v1122_v0 = vmul.f32 1.442695, %v1116_v4 }
 0x284   : > { %1717 = vpow2.f32 %v1122_v0  ;;  %v1154_v0 = vld [vmem:[#allocation5] sm:$0xff] }
 0x287   : > { %v1097_v12 = vpop.permute.xlu0 %1096 }
 0x288   : > { %v1114_v13 = vsub.f32 %v2029_v24, %v1097_v12 }
 0x28a   : > { %v1718_v32 = vpop.eup %1717  ;;  %v1118_v15 = vmul.f32 1.442695, %v1114_v13 }
 0x28b   : > { %v1140_v25 = vsel %vm1065_vm11, %v1718_v32, 0.0  ;;  %v1164_v27 = vmul.f32 %v1718_v32, %v2009_v52 }
 0x28c   : > { %1719 = vpow2.f32 %v1118_v15  ;;  %1141 = vadd.xlane.f32.xlu0 %v1140_v25 }
 0x28d   : > { %v1172_v33 = vsel %vm1065_vm11, %v1164_v27, 0.0 }
 0x28f   : > { %v1102_v26 = vpop.permute.xlu1 %1101 }
 0x290   : > { %v1115_v10 = vsub.f32 %v2043_v41, %v1102_v26 }
 0x292   : > { %v1720_v16 = vpop.eup %1719  ;;  %v1120_v28 = vmul.f32 1.442695, %v1115_v10 }
 0x293   : > { %v1134_v29 = vsel %vm1065_vm11, %v1720_v16, 0.0  ;;  %v1162_v39 = vmul.f32 %v1720_v16, %v2000_v30  ;;  %v1088_v30 = vmul.f32 1.442695, %v1083_v3 }
 0x294   : > { %1721 = vpow2.f32 %v1120_v28  ;;  %1135 = vadd.xlane.f32.xlu2 %v1134_v29  ;;  %1173 = vadd.xlane.f32.xlu0 %v1172_v33 }
 0x295   : > { %v1166_v17 = vsel %vm1065_vm11, %v1162_v39, 0.0 }
 0x29a   : > { %v1722_v24 = vpop.eup %1721 }
 0x29b   : > { %v1137_v34 = vsel %vm1065_vm11, %v1722_v24, 0.0  ;;  %v1163_v45 = vmul.f32 %v1722_v24, %v2002_v42  ;;  %v1086_v42 = vmul.f32 1.442695, %v1082_v61  ;;  %v1127_v61 = vld [vmem:[#allocation4 + $0x8] sm:$0xff] }
 0x29c   : > { %1138 = vadd.xlane.f32.xlu1 %v1137_v34  ;;  %1198 = vmax.xlane.f32.xlu0 %v1197_v37  ;;  %v2155_v34 = vld [vmem:[%s2200_s3 + $0x10] sm:$0xff] }
 0x29d   : > { %v1169_v14 = vsel %vm1065_vm11, %v1163_v45, 0.0 }
 0x29f   : > { %v1112_v38 = vpop.permute.xlu1 %1111 }
 0x2a0   : > { %v1117_v40 = vsub.f32 %v2054_v57, %v1112_v38 }
 0x2a2   : > { %v1124_v41 = vmul.f32 1.442695, %v1117_v40  ;;  %v1129_v40 = vld [vmem:[#allocation4 + $0x18] sm:$0xff] }
 0x2a4   : > { %1723 = vpow2.f32 %v1124_v41  ;;  %1167 = vadd.xlane.f32.xlu1 %v1166_v17 }
 0x2a5   : > { %1725 = vpow2.f32 %v1090_v48 }
 0x2a6   : > { %1727 = vpow2.f32 %v1086_v42 }
 0x2a7   : > { %1729 = vpow2.f32 %v1088_v30 }
 0x2aa   : > { %v1724_v43 = vpop.eup %1723 }
 0x2ab   : > { %v1143_v36 = vsel %vm1065_vm11, %v1724_v43, 0.0  ;;  %v1165_v19 = vmul.f32 %v1724_v43, %v2012_v63  ;;  %v1726_v49 = vpop.eup %1725  ;;  %v1157_v43 = vld [vmem:[#allocation5 + $0x18] sm:$0xff] }
 0x2ac   : > { %1144 = vadd.xlane.f32.xlu2 %v1143_v36  ;;  %v1132_v51 = vmul.f32 %v1726_v49, %v1128_v50  ;;  %v1728_v63 = vpop.eup %1727  ;;  %v1160_v21 = vmul.f32 %v1726_v49, %v1156_v54  ;;  %v1155_v54 = vld [vmem:[#allocation5 + $0x8] sm:$0xff] }
 0x2ad   : > { %v1175_v44 = vsel %vm1065_vm11, %v1165_v19, 0.0  ;;  %v1130_v56 = vmul.f32 %v1728_v63, %v1126_v55  ;;  %v2128_v31 = vpop.eup %1729  ;;  %v1158_v15 = vmul.f32 %v1728_v63, %v1154_v0  ;;  %v224_v55 = vld [vmem:[%s2200_s3] sm:$0xff] }
 0x2ae   : > { %1176 = vadd.xlane.f32.xlu1 %v1175_v44  ;;  %v1131_v1 = vmul.f32 %v2128_v31, %v1127_v61 }
 0x2b4   : > { %1170 = vadd.xlane.f32.xlu2 %v1169_v14 }
 0x2b6   : > { %1201 = vmax.xlane.f32.xlu1 %v1200_v20 }
 0x2bc   : > { %1195 = vmax.xlane.f32.xlu2 %v1194_v46 }
 0x2c4   : > { %1204 = vmax.xlane.f32.xlu2 %v1203_v47 }
 0x2ff   : > { %v1142_v52 = vpop.xlane.xlu0 %1141 }
 0x300   : > { %v1148_v53 = vadd.f32 %v1142_v52, %v1132_v51 }
 0x302   : > { %1152 = vst.msk [vmem:[#allocation4 + $0x10] sm:$0xff] %vm238_vm6, %v1148_v53 }
 0x307   : > { %v1174_v57 = vpop.xlane.xlu0 %1173  ;;  %v1136_v18 = vpop.xlane.xlu2 %1135 }
 0x308   : > { %v1180_v58 = vadd.f32 %v1174_v57, %v1160_v21  ;;  %v1146_v59 = vadd.f32 %v1136_v18, %v1130_v56  ;;  %v1159_v57 = vmul.f32 %v2128_v31, %v1155_v54 }
 0x309   : > { %v1220_v60 = vld [vmem:[#allocation4 + $0x10] sm:$0xff] }
 0x30a   : > { %1731 = vrcp.f32 %v1220_v60  ;;  %1184 = vst.msk [vmem:[#allocation5 + $0x10] sm:$0xff] %vm238_vm6, %v1180_v58  ;;  %v1263_v12 = vand.u32 2147483648, %v1220_v60  ;;  %v1261_v32 = vand.u32 2147483647, %v1220_v60  ;;  %vm1257_vm13 = vweird.f32 %v1220_v60 }
 0x30b   : > { %1150 = vst.msk [vmem:[#allocation4] sm:$0xff] %vm238_vm6, %v1146_v59 }
 0x30c   : > { %v1264_v23 = vor.u32 1.1754944e-38, %v1263_v12  ;;  %vm1262_vm15 = vcmp.eq.f32.partialorder %v1261_v32, 8.507059e+37 }
 0x30f   : > { %v1139_v2 = vpop.xlane.xlu1 %1138  ;;  %v1199_v3 = vpop.xlane.xlu0 %1198 }
 0x310   : > { %v1732_v5 = vpop.eup %1731  ;;  %v1147_v7 = vadd.f32 %v1139_v2, %v1131_v1  ;;  %v1207_v6 = vmax.f32 %v1191_v62, %v1199_v3 }
 0x311   : > { %v1253_v9 = vmul.f32 %v1732_v5, %v1220_v60  ;;  %vm1258_vm12 = vweird.f32 %v1732_v5  ;;  %v1216_v29 = vld [vmem:[#allocation5 + $0x10] sm:$0xff] }
 0x312   : > { %v1218_v11 = vld [vmem:[#allocation4] sm:$0xff]  ;;  %1151 = vst.msk [vmem:[#allocation4 + $0x8] sm:$0xff] %vm238_vm6, %v1147_v7  ;;  %vm1259_vm14 = vmor %vm1257_vm13, %vm1258_vm12  ;;  %v1192_v60 = vld [vmem:[#allocation6 + $0x10] sm:$0xff] }
 0x313   : > { %v1254_v4 = vsub.f32 1.0, %v1253_v9  ;;  %1733 = vrcp.f32 %v1218_v11  ;;  %1211 = vst.msk [vmem:[#allocation6 + $0x8] sm:$0xff] %vm238_vm6, %v1207_v6  ;;  %v1233_v17 = vand.u32 2147483648, %v1218_v11  ;;  %v1231_v44 = vand.u32 2147483647, %v1218_v11 }
 0x314   : > { %1735 = vpow2.f32 %v1092_v8  ;;  %vm1227_vm1 = vweird.f32 %v1218_v11 }
 0x315   : > { %v1255_v13 = vmul.f32 %v1732_v5, %v1254_v4  ;;  %v1234_v50 = vor.u32 1.1754944e-38, %v1233_v17  ;;  %vm1232_vm3 = vcmp.eq.f32.partialorder %v1231_v44, 8.507059e+37 }
 0x317   : > { %v1256_v25 = vadd.f32 %v1732_v5, %v1255_v13  ;;  %v1168_v22 = vpop.xlane.xlu1 %1167 }
 0x318   : > { %v1178_v26 = vadd.f32 %v1168_v22, %v1158_v15 }
 0x319   : > { %v1734_v27 = vpop.eup %1733  ;;  %v1260_v10 = vsel %vm1259_vm14, %v1732_v5, %v1256_v25  ;;  %v2143_v16 = vld [vmem:[#allocation4 + $0x8] sm:$0xff]  ;;  %v1190_v5 = vld [vmem:[#allocation6] sm:$0xff] }
 0x31a   : > { %v1265_v28 = vsel %vm1262_vm15, %v1264_v23, %v1260_v10  ;;  %v1223_v33 = vmul.f32 %v1734_v27, %v1218_v11  ;;  %1737 = vrcp.f32 %v2143_v16  ;;  %v1287_v24 = vld [vmem:[#allocation6 + $0x8] sm:$0xff]  ;;  %1182 = vst.msk [vmem:[#allocation5] sm:$0xff] %vm238_vm6, %v1178_v26  ;;  %v1736_v37 = vpop.eup %1735  ;;  %vm1228_vm0 = vweird.f32 %v1734_v27  ;;  %v1193_v10 = vld [vmem:[#allocation6 + $0x18] sm:$0xff] }
 0x31b   : > { %v1266_v38 = vmul.f32 %v1265_v28, %v1216_v29  ;;  %v1291_v39 = vadd.f32 %v1287_v24, %v2141_v35  ;;  %v1133_v45 = vmul.f32 %v1736_v37, %v1129_v40  ;;  %v1161_v48 = vmul.f32 %v1736_v37, %v1157_v43  ;;  %vm1229_vm2 = vmor %vm1227_vm1, %vm1228_vm0 }
 0x31c   : > { %v1224_v41 = vsub.f32 1.0, %v1223_v33  ;;  %v1248_v2 = vand.u32 2147483648, %v2143_v16  ;;  %vm1242_vm5 = vweird.f32 %v2143_v16  ;;  %v1246_v31 = vand.u32 2147483647, %v2143_v16 }
 0x31d   : > { %1299 = vst.msk [vmem:[%s2148_s16 + $0x28] sm:$0xff] %vm238_vm6, %v1291_v39  ;;  %v1284_v36 = vadd.f32 %v1266_v38, %v2155_v34  ;;  %v227_v39 = vld [vmem:[%s2200_s3 + $0x18] sm:$0xff] }
 0x31e   : > { %v1225_v19 = vmul.f32 %v1734_v27, %v1224_v41  ;;  %v1249_v6 = vor.u32 1.1754944e-38, %v1248_v2  ;;  %vm1247_vm8 = vcmp.eq.f32.partialorder %v1246_v31, 8.507059e+37 }
 0x31f   : > { %v1145_v14 = vpop.xlane.xlu2 %1144  ;;  %1296 = vst.msk [vmem:[%s2148_s16 + $0x10] sm:$0xff] %vm238_vm6, %v1284_v36 }
 0x320   : > { %v1738_v20 = vpop.eup %1737  ;;  %v1226_v46 = vadd.f32 %v1734_v27, %v1225_v19  ;;  %v1149_v47 = vadd.f32 %v1145_v14, %v1133_v45 }
 0x321   : > { %v1238_v42 = vmul.f32 %v1738_v20, %v2143_v16  ;;  %v1214_v49 = vld [vmem:[#allocation5] sm:$0xff]  ;;  %v1177_v51 = vpop.xlane.xlu1 %1176  ;;  %vm1243_vm4 = vweird.f32 %v1738_v20 }
 0x322   : > { %v1230_v52 = vsel %vm1229_vm2, %v1734_v27, %v1226_v46  ;;  %1153 = vst.msk [vmem:[#allocation4 + $0x18] sm:$0xff] %vm238_vm6, %v1149_v47  ;;  %v1181_v53 = vadd.f32 %v1177_v51, %v1161_v48  ;;  %vm1244_vm7 = vmor %vm1242_vm5, %vm1243_vm4 }
 0x323   : > { %v1239_v30 = vsub.f32 1.0, %v1238_v42  ;;  %v1235_v63 = vsel %vm1232_vm3, %v1234_v50, %v1230_v52 }
 0x324   : > { %v1236_v21 = vmul.f32 %v1235_v63, %v1214_v49  ;;  %1185 = vst.msk [vmem:[#allocation5 + $0x18] sm:$0xff] %vm238_vm6, %v1181_v53 }
 0x325   : > { %v1240_v56 = vmul.f32 %v1738_v20, %v1239_v30 }
 0x326   : > { %v1282_v18 = vadd.f32 %v1236_v21, %v224_v55 }
 0x327   : > { %v1171_v58 = vpop.xlane.xlu2 %1170  ;;  %v1241_v1 = vadd.f32 %v1738_v20, %v1240_v56 }
 0x328   : > { %v1179_v59 = vadd.f32 %v1171_v58, %v1159_v57  ;;  %1294 = vst.msk [vmem:[%s2148_s16] sm:$0xff] %vm238_vm6, %v1282_v18 }
 0x329   : > { %v1221_v61 = vld [vmem:[#allocation4 + $0x18] sm:$0xff]  ;;  %v1202_v62 = vpop.xlane.xlu1 %1201  ;;  %v1245_v7 = vsel %vm1244_vm7, %v1738_v20, %v1241_v1 }
 0x32a   : > { %1739 = vrcp.f32 %v1221_v61  ;;  %1183 = vst.msk [vmem:[#allocation5 + $0x8] sm:$0xff] %vm238_vm6, %v1179_v59  ;;  %v1208_v3 = vmax.f32 %v1192_v60, %v1202_v62  ;;  %v1250_v0 = vsel %vm1247_vm8, %v1249_v6, %v1245_v7  ;;  %v1278_v15 = vand.u32 2147483648, %v1221_v61 }
 0x32b   : > { %v1276_v26 = vand.u32 2147483647, %v1221_v61  ;;  %vm1272_vm10 = vweird.f32 %v1221_v61  ;;  %v1217_v37 = vld [vmem:[#allocation5 + $0x18] sm:$0xff] }
 0x32c   : > { %1212 = vst.msk [vmem:[#allocation6 + $0x10] sm:$0xff] %vm238_vm6, %v1208_v3  ;;  %v1279_v29 = vor.u32 1.1754944e-38, %v1278_v15 }
 0x32d   : > { %vm1277_vm12 = vcmp.eq.f32.partialorder %v1276_v26, 8.507059e+37 }
 0x32f   : > { %v1196_v8 = vpop.xlane.xlu2 %1195 }
 0x330   : > { %v1740_v9 = vpop.eup %1739  ;;  %v1206_v11 = vmax.f32 %v1190_v5, %v1196_v8 }
 0x331   : > { %v1268_v4 = vmul.f32 %v1740_v9, %v1221_v61  ;;  %v1215_v12 = vld [vmem:[#allocation5 + $0x8] sm:$0xff]  ;;  %vm1273_vm9 = vweird.f32 %v1740_v9 }
 0x332   : > { %v1251_v13 = vmul.f32 %v1250_v0, %v1215_v12  ;;  %1210 = vst.msk [vmem:[#allocation6] sm:$0xff] %vm238_vm6, %v1206_v11  ;;  %vm1274_vm11 = vmor %vm1272_vm10, %vm1273_vm9 }
 0x333   : > { %v1269_v32 = vsub.f32 1.0, %v1268_v4  ;;  %v1288_v22 = vld [vmem:[#allocation6 + $0x10] sm:$0xff] }
 0x334   : > { %v1283_v25 = vadd.f32 %v1251_v13, %v2141_v35  ;;  %v1292_v27 = vadd.f32 %v1288_v22, %v2155_v34 }
 0x335   : > { %v1270_v23 = vmul.f32 %v1740_v9, %v1269_v32 }
 0x336   : > { %1295 = vst.msk [vmem:[%s2148_s16 + $0x8] sm:$0xff] %vm238_vm6, %v1283_v25 }
 0x337   : > { %v1271_v16 = vadd.f32 %v1740_v9, %v1270_v23  ;;  %1300 = vst.msk [vmem:[%s2148_s16 + $0x30] sm:$0xff] %vm238_vm6, %v1292_v27  ;;  %v1205_v28 = vpop.xlane.xlu2 %1204 }
 0x338   : > { %v1209_v35 = vmax.f32 %v1193_v10, %v1205_v28 }
 0x339   : > { %v1275_v33 = vsel %vm1274_vm11, %v1740_v9, %v1271_v16  ;;  %v1286_v24 = vld [vmem:[#allocation6] sm:$0xff] }
 0x33a   : > { %v1280_v38 = vsel %vm1277_vm12, %v1279_v29, %v1275_v33  ;;  %v1290_v34 = vadd.f32 %v1286_v24, %v224_v55  ;;  %1213 = vst.msk [vmem:[#allocation6 + $0x18] sm:$0xff] %vm238_vm6, %v1209_v35 }
 0x33b   : > { %v1281_v40 = vmul.f32 %v1280_v38, %v1217_v37 }
 0x33c   : > { %1298 = vst.msk [vmem:[%s2148_s16 + $0x20] sm:$0xff] %vm238_vm6, %v1290_v34 }
 0x33d   : > { %v1285_v41 = vadd.f32 %v1281_v40, %v227_v39 }
 0x33f   : > { %1297 = vst.msk [vmem:[%s2148_s16 + $0x18] sm:$0xff] %vm238_vm6, %v1285_v41 }
 0x341   : > { %v1289_v17 = vld [vmem:[#allocation6 + $0x18] sm:$0xff] }
 0x342   : > { %v1293_v43 = vadd.f32 %v1289_v17, %v227_v39 }
 0x344   : > { %1301 = vst.msk [vmem:[%s2148_s16 + $0x38] sm:$0xff] %vm238_vm6, %v1293_v43 }
 0x345 PF: > { %s14_s15 = sadd.s32 1, %s1747_s15  }
 0x346   : > { %p11_p4 = scmp.ge.s32.totalorder %s14_s15, 4  }
 0x348   :  { %13 = sbr.rel (!%p11_p4) target bundleno = 1 (0x1), region = 77 }

</bundles_post_ra>
